<compile_context>
chip_gen: v5e
topology: v5e:2x2
jax: 0.10.0
libtpu: 0.0.40
codegen_flags: <defaults>
</compile_context>

<pallas_src>
import math
import functools

import jax
import jax.numpy as jnp
from jax.experimental import pallas as pl
from jax.experimental.pallas import tpu as pltpu


# ----------------------------------------------------------------------------
# In-kernel math helpers
# ----------------------------------------------------------------------------
def _erf_approx(x):
    # erfc rational approximation (Numerical Recipes 6.2), |err| < 1.2e-7.
    # The single exp() lands on the EUP slot; the polynomial is cheap VPU work.
    # NOTE: the divide is kept exact — pl.reciprocal(approx=True) (rel err ~2^-12)
    # risks the 1e-4 reference tolerance.
    a = jnp.abs(x)
    t = 1.0 / (1.0 + 0.5 * a)
    poly = -1.26551223 + t * (1.00002368 + t * (0.37409196 + t * (0.09678418 +
           t * (-0.18628806 + t * (0.27886807 + t * (-1.13520398 + t * (1.48851587 +
           t * (-0.82215223 + t * 0.17087277))))))))
    tau = t * jnp.exp(-a * a + poly)
    erf_abs = 1.0 - tau
    return jnp.where(x >= 0.0, erf_abs, -erf_abs)


def _gelu_exact(x):
    # F.gelu default: 0.5 * x * (1 + erf(x / sqrt(2)))
    return 0.5 * x * (1.0 + _erf_approx(x * (1.0 / math.sqrt(2.0))))


# ----------------------------------------------------------------------------
# Pallas kernel: one chunk of `rows = frames_per_step * H` image rows per step.
# ----------------------------------------------------------------------------
def _ffn_kernel(x_ref, l_ref, wfx_ref, wfl_ref, o_ref, *, H, WD):
    R = x_ref.shape[0]                      # rows in this block (multiple of H)

    # Frame-boundary row masks (also cover batch boundaries and the roll
    # wrap-around, since every block is a whole number of frames).
    h_idx = jax.lax.broadcasted_iota(jnp.int32, (R, 1), 0) % H
    rmask_dn = (h_idx != 0).astype(jnp.float32)        # output row has a row above
    rmask_up = (h_idx != (H - 1)).astype(jnp.float32)  # output row has a row below

    def branch(inp_ref, wf_ref):
        # One MXU matmul: pointwise conv + horizontal taps + depthwise weights
        # + mult-sum are all folded into wf.  Columns [kh*WD:(kh+1)*WD] hold the
        # vertical-tap-kh partial computed from each source row.
        p = jnp.dot(inp_ref[...], wf_ref[...], preferred_element_type=jnp.float32)
        q_top = p[:, 0 * WD:1 * WD]   # kh=0: weight applied to the row ABOVE the output
        q_mid = p[:, 1 * WD:2 * WD]   # kh=1: in place
        q_bot = p[:, 2 * WD:3 * WD]   # kh=2: row BELOW
        # z[h] = q_top[h-1] + q_mid[h] + q_bot[h+1]   (zeros across frame edges)
        return (q_mid
                + pltpu.roll(q_top, shift=1, axis=0) * rmask_dn
                + pltpu.roll(q_bot, shift=R - 1, axis=0) * rmask_up)

    zx = branch(x_ref, wfx_ref)
    zl = branch(l_ref, wfl_ref)
    o_ref[...] = (zx * _gelu_exact(zl)).astype(o_ref.dtype)


# ----------------------------------------------------------------------------
# Host-side weight packing (done once per set of parameters)
# ----------------------------------------------------------------------------
def _pack_fused(w1, w2, W, C, D, mult):
    """Fold pointwise conv (w1: [D*mult, C]) and depthwise (1,3,3) conv
    (w2: [D, mult, 3, 3], torch group layout) into one matmul weight
    [W*C, 3*W*D]:  row = w_in*C + c, column = kh*W*D + w_out*D + d.
    Horizontal zero-padding of the 3x3 conv is baked in by the band structure.
    """
    w1r = w1.reshape(D, mult, C)                      # out channel m = d*mult + mi
    # A[kh, kw, c, d] = sum_mi w2[d, mi, kh, kw] * w1[d*mult+mi, c]
    A = jnp.einsum("dmhw,dmc->hwcd", w2, w1r)         # [3, 3, C, D]
    blocks = []
    for kh in range(3):
        M = jnp.zeros((W * C, W * D), dtype=w1.dtype)
        for kw in range(3):
            # band: contribution of input pixel column w_in = w_out + (kw - 1)
            band = jnp.eye(W, k=-(kw - 1), dtype=w1.dtype)     # [w_in, w_out]
            M = M + jnp.kron(band, A[kh, kw])
        blocks.append(M)
    return jnp.concatenate(blocks, axis=1)            # [W*C, 3*W*D]


# ----------------------------------------------------------------------------
# Block-size selection (rows per grid step)
# ----------------------------------------------------------------------------
def _pick_frames_per_step(F, H, row_bytes):
    TARGET_ROWS = 1024                 # amortize the ~600-cycle per-step overhead
    MAX_BLOCK_BYTES = 2 * 1024 * 1024  # per-array block cap, safe on v7x (64 MiB VMEM)
    cap_rows = max(H, min(TARGET_ROWS, MAX_BLOCK_BYTES // max(row_bytes, 1)))
    cap = max(1, cap_rows // H)
    # frames-per-step must divide F; partial blocks need rows % 8 == 0 (sublane tiling)
    feas = [d for d in range(1, F + 1)
            if F % d == 0 and d <= cap and ((d * H) % 8 == 0 or d == F)]
    if not feas:
        # TODO(synk): pad the row axis for awkward H; full-array single block for now.
        return F
    best = max(feas)
    # Prefer an even (>=2) step count so the "parallel" axis can split across
    # v7x's two TensorCores, as long as blocks stay at least half as big.
    even = [d for d in feas if (F // d) % 2 == 0]
    if even and max(even) * 2 >= best:
        best = max(even)
    return best


# ----------------------------------------------------------------------------
# Public wrapper (channels-last — no host-side layout passes)
# ----------------------------------------------------------------------------
def cross_spatial_ffn(x, last, params, *, mult=1, single_buffer_weights=True):
    """x, last: [B, T, H, W, C] float32 (channels-last / NDHWC).  Same shape out.

    Keep activations channels-last through the surrounding model; the flatten to
    the kernel's [B*T*H, W*C] layout is then a free contiguous reshape (no HBM
    transpose passes).  `params` holds the torch Conv3d weights:
      w1x/w1l: [dim*mult, dim]  (1x1x1 conv),  w2x/w2l: [dim, mult, 3, 3] (depthwise).
    """
    B, T, H, W, C = x.shape
    D = C
    WC, WD = W * C, W * D
    F = B * T                                   # total frames
    RT = F * H                                  # total image rows

    x2 = x.reshape(RT, WC)                      # free views (contiguous)
    l2 = last.reshape(RT, WC)

    # (In a real model these fused weights would be precomputed once.)
    wfx = _pack_fused(params["w1x"], params["w2x"], W, C, D, mult)   # [WC, 3*WD]
    wfl = _pack_fused(params["w1l"], params["w2l"], W, C, D, mult)

    fp = _pick_frames_per_step(F, H, WC * 4)
    rows = fp * H
    grid = (F // fp,)

    # Grid-invariant weights: single-buffer to save VMEM headroom.
    w_pipeline = pl.Buffered(buffer_count=1) if single_buffer_weights else None

    kernel = functools.partial(_ffn_kernel, H=H, WD=WD)
    out = pl.pallas_call(
        kernel,
        out_shape=jax.ShapeDtypeStruct((RT, WD), jnp.float32),
        grid=grid,
        in_specs=[
            pl.BlockSpec((rows, WC), lambda i: (i, 0)),
            pl.BlockSpec((rows, WC), lambda i: (i, 0)),
            pl.BlockSpec((WC, 3 * WD), lambda i: (0, 0), pipeline_mode=w_pipeline),
            pl.BlockSpec((WC, 3 * WD), lambda i: (0, 0), pipeline_mode=w_pipeline),
        ],
        out_specs=pl.BlockSpec((rows, WD), lambda i: (i, 0)),
        compiler_params=pltpu.CompilerParams(
            dimension_semantics=("parallel",),
            vmem_limit_bytes=48 * 1024 * 1024),   # within v7x 64 MiB; fine on v5e/v6e
    )(x2, l2, wfx, wfl)

    return out.reshape(B, T, H, W, D)           # free reshape, stays channels-last


# ----------------------------------------------------------------------------
# Pure-JAX reference (torch NCDHW layout, for validation only)
# ----------------------------------------------------------------------------
def _ref_branch(inp, w1, w2, mult):
    B, C, T, H, W = inp.shape
    D = C
    y = jnp.einsum("bcthw,mc->bmthw", inp, w1)
    yp = jnp.pad(y, ((0, 0), (0, 0), (0, 0), (1, 1), (1, 1)))
    z = jnp.zeros((B, D, T, H, W), jnp.float32)
    for mi in range(mult):
        yg = yp[:, mi::mult]          # channels d*mult + mi, d = 0..D-1
        for kh in range(3):
            for kw in range(3):
                z = z + (w2[:, mi, kh, kw][None, :, None, None, None]
                         * yg[:, :, :, kh:kh + H, kw:kw + W])
    return z


def cross_spatial_ffn_ref(x, last, params, *, mult=1):
    zx = _ref_branch(x, params["w1x"], params["w2x"], mult)
    zl = _ref_branch(last, params["w1l"], params["w2l"], mult)
    gl = 0.5 * zl * (1.0 + jax.scipy.special.erf(zl / math.sqrt(2.0)))
    return zx * gl


# ----------------------------------------------------------------------------
if __name__ == "__main__":
    def run_case(B, C, T, H, W, mult, keys, single_buffer_weights):
        D, M = C, C * mult
        kx, kl, k1x, k2x, k1l, k2l = keys
        # channels-last activations (the layout the surrounding model should keep)
        x = jax.random.normal(kx, (B, T, H, W, C), jnp.float32)
        last = jax.random.normal(kl, (B, T, H, W, C), jnp.float32)
        params = {
            "w1x": 0.2 * jax.random.normal(k1x, (M, C), jnp.float32),           # Conv3d(dim, dim*mult, 1)
            "w2x": 0.2 * jax.random.normal(k2x, (D, mult, 3, 3), jnp.float32),  # Conv3d(.., (1,3,3), groups=dim)
            "w1l": 0.2 * jax.random.normal(k1l, (M, C), jnp.float32),
            "w2l": 0.2 * jax.random.normal(k2l, (D, mult, 3, 3), jnp.float32),
        }
        fn = jax.jit(functools.partial(cross_spatial_ffn, mult=mult,
                                       single_buffer_weights=single_buffer_weights))
        out = jax.block_until_ready(fn(x, last, params))
        assert out.shape == (B, T, H, W, C)
        # reference works in torch's NCDHW layout (test-only transposes)
        x_nc = jnp.transpose(x, (0, 4, 1, 2, 3))
        l_nc = jnp.transpose(last, (0, 4, 1, 2, 3))
        ref = jnp.transpose(cross_spatial_ffn_ref(x_nc, l_nc, params, mult=mult),
                            (0, 2, 3, 4, 1))
        max_err = float(jnp.max(jnp.abs(out - ref)))
        if max_err > 1e-4:
            raise AssertionError(
                f"Pallas kernel mismatch vs reference (shape {out.shape}): {max_err}")

    def run_all(single_buffer_weights):
        ks = jax.random.split(jax.random.PRNGKey(0), 12)
        # DSTCT's dim=4, mult=2 (STCAB): W*C = 128 lane-dense, 2-step grid (even).
        run_case(2, 4, 2, 32, 32, 2, ks[:6], single_buffer_weights)
        # dim=8, mult=1, non-power-of-two frame count: single full-block step.
        run_case(1, 8, 3, 16, 16, 1, ks[6:12], single_buffer_weights)

    try:
        run_all(True)
    except Exception:
        # Fallback for JAX versions whose TPU pallas_call rejects
        # pipeline_mode=pl.Buffered(1) on grid-invariant operands.
        run_all(False)

    print("KERNEL_OK")
</pallas_src>

<mosaic_0001>
module attributes {stable_mosaic.version = 11 : i64} {
  func.func @_ffn_kernel(%arg0: i32, %arg1: memref<64x128xf32, #tpu.memory_space<vmem>>, %arg2: memref<64x128xf32, #tpu.memory_space<vmem>>, %arg3: memref<128x384xf32, #tpu.memory_space<vmem>>, %arg4: memref<128x384xf32, #tpu.memory_space<vmem>>, %arg5: memref<64x128xf32, #tpu.memory_space<vmem>>) attributes {dimension_semantics = [#tpu.dimension_semantics<parallel>], iteration_bounds = array<i64: 2>, scalar_prefetch = 0 : i64, scratch_operands = 0 : i64, tpu.core_type = #tpu.core_type<tc>, window_params = [{transform_indices = @transform_0, window_bounds = array<i64: 64, 128>}, {transform_indices = @transform_1, window_bounds = array<i64: 64, 128>}, {pipeline_mode = #tpu.pipeline_mode<synchronous>, transform_indices = @transform_2, window_bounds = array<i64: 128, 384>}, {pipeline_mode = #tpu.pipeline_mode<synchronous>, transform_indices = @transform_3, window_bounds = array<i64: 128, 384>}, {transform_indices = @transform_4, window_bounds = array<i64: 64, 128>}]} {
    %0 = tpu.iota {dimensions = array<i32: 0>} : vector<64x1xi32>
    %c32_i32 = arith.constant 32 : i32
    %c0_i32 = arith.constant 0 : i32
    %1 = arith.cmpi eq, %c32_i32, %c0_i32 : i32
    %c1_i32 = arith.constant 1 : i32
    %2 = arith.select %1, %c1_i32, %c32_i32 : i32
    %3 = vector.broadcast %2 : i32 to vector<64x1xi32>
    %4 = arith.remsi %0, %3 : vector<64x1xi32>
    %c0_i32_0 = arith.constant 0 : i32
    %5 = vector.broadcast %c0_i32_0 : i32 to vector<64x1xi32>
    %6 = arith.cmpi ne, %4, %5 : vector<64x1xi32>
    %c0_i32_1 = arith.constant 0 : i32
    %7 = vector.broadcast %c0_i32_1 : i32 to vector<64x1xi32>
    %8 = arith.cmpi slt, %4, %7 : vector<64x1xi32>
    %c0_i32_2 = arith.constant 0 : i32
    %9 = arith.cmpi slt, %2, %c0_i32_2 : i32
    %10 = vector.broadcast %9 : i1 to vector<64x1xi1>
    %11 = vector.broadcast %10 : vector<64x1xi1> to vector<64x1xi1>
    %12 = arith.xori %8, %11 : vector<64x1xi1>
    %13 = arith.andi %12, %6 : vector<64x1xi1>
    %14 = vector.broadcast %2 : i32 to vector<64x1xi32>
    %15 = arith.addi %4, %14 : vector<64x1xi32>
    %16 = arith.select %13, %15, %4 : vector<64x1xi1>, vector<64x1xi32>
    %c0_i32_3 = arith.constant 0 : i32
    %17 = vector.broadcast %c0_i32_3 : i32 to vector<64x1xi32>
    %18 = arith.cmpi ne, %16, %17 : vector<64x1xi32>
    %19 = arith.extui %18 : vector<64x1xi1> to vector<64x1xi32>
    %20 = arith.sitofp %19 : vector<64x1xi32> to vector<64x1xf32>
    %c31_i32 = arith.constant 31 : i32
    %21 = vector.broadcast %c31_i32 : i32 to vector<64x1xi32>
    %22 = arith.cmpi ne, %16, %21 : vector<64x1xi32>
    %23 = arith.extui %22 : vector<64x1xi1> to vector<64x1xi32>
    %24 = arith.sitofp %23 : vector<64x1xi32> to vector<64x1xf32>
    %c0 = arith.constant 0 : index
    %c0_4 = arith.constant 0 : index
    %25 = vector.load %arg1[%c0, %c0_4] : memref<64x128xf32, #tpu.memory_space<vmem>>, vector<64x128xf32>
    %c0_5 = arith.constant 0 : index
    %c0_6 = arith.constant 0 : index
    %26 = vector.load %arg3[%c0_5, %c0_6] : memref<128x384xf32, #tpu.memory_space<vmem>>, vector<128x384xf32>
    %cst = arith.constant dense<0.000000e+00> : vector<64x384xf32>
    %27 = tpu.matmul %25, %26, %cst {dimension_numbers = #tpu.dot_dimension_numbers<[1], [0], [0], [1], [0, 0, 1, 1], [], []>} : vector<64x128xf32>, vector<128x384xf32>, vector<64x384xf32> -> vector<64x384xf32>
    %28 = vector.extract_strided_slice %27 {offsets = [0, 0], sizes = [64, 128], strides = [1, 1]} : vector<64x384xf32> to vector<64x128xf32>
    %29 = vector.extract_strided_slice %27 {offsets = [0, 128], sizes = [64, 128], strides = [1, 1]} : vector<64x384xf32> to vector<64x128xf32>
    %30 = vector.extract_strided_slice %27 {offsets = [0, 256], sizes = [64, 128], strides = [1, 1]} : vector<64x384xf32> to vector<64x128xf32>
    %c1_i32_7 = arith.constant 1 : i32
    %31 = tpu.dynamic_rotate %28 by %c1_i32_7 dim 0 : vector<64x128xf32>, i32 -> vector<64x128xf32>
    %32 = vector.broadcast %20 : vector<64x1xf32> to vector<64x128xf32>
    %33 = arith.mulf %31, %32 : vector<64x128xf32>
    %34 = arith.addf %29, %33 : vector<64x128xf32>
    %c63_i32 = arith.constant 63 : i32
    %35 = tpu.dynamic_rotate %30 by %c63_i32 dim 0 : vector<64x128xf32>, i32 -> vector<64x128xf32>
    %36 = vector.broadcast %24 : vector<64x1xf32> to vector<64x128xf32>
    %37 = arith.mulf %35, %36 : vector<64x128xf32>
    %38 = arith.addf %34, %37 : vector<64x128xf32>
    %c0_8 = arith.constant 0 : index
    %c0_9 = arith.constant 0 : index
    %39 = vector.load %arg2[%c0_8, %c0_9] : memref<64x128xf32, #tpu.memory_space<vmem>>, vector<64x128xf32>
    %c0_10 = arith.constant 0 : index
    %c0_11 = arith.constant 0 : index
    %40 = vector.load %arg4[%c0_10, %c0_11] : memref<128x384xf32, #tpu.memory_space<vmem>>, vector<128x384xf32>
    %cst_12 = arith.constant dense<0.000000e+00> : vector<64x384xf32>
    %41 = tpu.matmul %39, %40, %cst_12 {dimension_numbers = #tpu.dot_dimension_numbers<[1], [0], [0], [1], [0, 0, 1, 1], [], []>} : vector<64x128xf32>, vector<128x384xf32>, vector<64x384xf32> -> vector<64x384xf32>
    %42 = vector.extract_strided_slice %41 {offsets = [0, 0], sizes = [64, 128], strides = [1, 1]} : vector<64x384xf32> to vector<64x128xf32>
    %43 = vector.extract_strided_slice %41 {offsets = [0, 128], sizes = [64, 128], strides = [1, 1]} : vector<64x384xf32> to vector<64x128xf32>
    %44 = vector.extract_strided_slice %41 {offsets = [0, 256], sizes = [64, 128], strides = [1, 1]} : vector<64x384xf32> to vector<64x128xf32>
    %c1_i32_13 = arith.constant 1 : i32
    %45 = tpu.dynamic_rotate %42 by %c1_i32_13 dim 0 : vector<64x128xf32>, i32 -> vector<64x128xf32>
    %46 = vector.broadcast %20 : vector<64x1xf32> to vector<64x128xf32>
    %47 = arith.mulf %45, %46 : vector<64x128xf32>
    %48 = arith.addf %43, %47 : vector<64x128xf32>
    %c63_i32_14 = arith.constant 63 : i32
    %49 = tpu.dynamic_rotate %44 by %c63_i32_14 dim 0 : vector<64x128xf32>, i32 -> vector<64x128xf32>
    %50 = vector.broadcast %24 : vector<64x1xf32> to vector<64x128xf32>
    %51 = arith.mulf %49, %50 : vector<64x128xf32>
    %52 = arith.addf %48, %51 : vector<64x128xf32>
    %cst_15 = arith.constant 5.000000e-01 : f32
    %53 = vector.broadcast %cst_15 : f32 to vector<64x128xf32>
    %54 = arith.mulf %53, %52 : vector<64x128xf32>
    %cst_16 = arith.constant 0.707106769 : f32
    %55 = vector.broadcast %cst_16 : f32 to vector<64x128xf32>
    %56 = arith.mulf %52, %55 : vector<64x128xf32>
    %57 = math.absf %56 : vector<64x128xf32>
    %cst_17 = arith.constant 5.000000e-01 : f32
    %58 = vector.broadcast %cst_17 : f32 to vector<64x128xf32>
    %59 = arith.mulf %58, %57 : vector<64x128xf32>
    %cst_18 = arith.constant 1.000000e+00 : f32
    %60 = vector.broadcast %cst_18 : f32 to vector<64x128xf32>
    %61 = arith.addf %60, %59 : vector<64x128xf32>
    %cst_19 = arith.constant 1.000000e+00 : f32
    %62 = vector.broadcast %cst_19 : f32 to vector<64x128xf32>
    %63 = arith.divf %62, %61 : vector<64x128xf32>
    %cst_20 = arith.constant 0.170872763 : f32
    %64 = vector.broadcast %cst_20 : f32 to vector<64x128xf32>
    %65 = arith.mulf %63, %64 : vector<64x128xf32>
    %cst_21 = arith.constant -0.822152256 : f32
    %66 = vector.broadcast %cst_21 : f32 to vector<64x128xf32>
    %67 = arith.addf %66, %65 : vector<64x128xf32>
    %68 = arith.mulf %63, %67 : vector<64x128xf32>
    %cst_22 = arith.constant 1.48851585 : f32
    %69 = vector.broadcast %cst_22 : f32 to vector<64x128xf32>
    %70 = arith.addf %69, %68 : vector<64x128xf32>
    %71 = arith.mulf %63, %70 : vector<64x128xf32>
    %cst_23 = arith.constant -1.13520396 : f32
    %72 = vector.broadcast %cst_23 : f32 to vector<64x128xf32>
    %73 = arith.addf %72, %71 : vector<64x128xf32>
    %74 = arith.mulf %63, %73 : vector<64x128xf32>
    %cst_24 = arith.constant 0.278868079 : f32
    %75 = vector.broadcast %cst_24 : f32 to vector<64x128xf32>
    %76 = arith.addf %75, %74 : vector<64x128xf32>
    %77 = arith.mulf %63, %76 : vector<64x128xf32>
    %cst_25 = arith.constant -0.186288059 : f32
    %78 = vector.broadcast %cst_25 : f32 to vector<64x128xf32>
    %79 = arith.addf %78, %77 : vector<64x128xf32>
    %80 = arith.mulf %63, %79 : vector<64x128xf32>
    %cst_26 = arith.constant 0.0967841818 : f32
    %81 = vector.broadcast %cst_26 : f32 to vector<64x128xf32>
    %82 = arith.addf %81, %80 : vector<64x128xf32>
    %83 = arith.mulf %63, %82 : vector<64x128xf32>
    %cst_27 = arith.constant 0.374091953 : f32
    %84 = vector.broadcast %cst_27 : f32 to vector<64x128xf32>
    %85 = arith.addf %84, %83 : vector<64x128xf32>
    %86 = arith.mulf %63, %85 : vector<64x128xf32>
    %cst_28 = arith.constant 1.00002372 : f32
    %87 = vector.broadcast %cst_28 : f32 to vector<64x128xf32>
    %88 = arith.addf %87, %86 : vector<64x128xf32>
    %89 = arith.mulf %63, %88 : vector<64x128xf32>
    %cst_29 = arith.constant -1.26551223 : f32
    %90 = vector.broadcast %cst_29 : f32 to vector<64x128xf32>
    %91 = arith.addf %90, %89 : vector<64x128xf32>
    %cst_30 = arith.constant 0.000000e+00 : f32
    %92 = vector.broadcast %cst_30 : f32 to vector<64x128xf32>
    %93 = arith.subf %92, %57 : vector<64x128xf32>
    %94 = arith.mulf %93, %57 : vector<64x128xf32>
    %95 = arith.addf %94, %91 : vector<64x128xf32>
    %96 = math.exp %95 : vector<64x128xf32>
    %97 = arith.mulf %63, %96 : vector<64x128xf32>
    %cst_31 = arith.constant 1.000000e+00 : f32
    %98 = vector.broadcast %cst_31 : f32 to vector<64x128xf32>
    %99 = arith.subf %98, %97 : vector<64x128xf32>
    %cst_32 = arith.constant 0.000000e+00 : f32
    %100 = vector.broadcast %cst_32 : f32 to vector<64x128xf32>
    %101 = arith.cmpf oge, %56, %100 : vector<64x128xf32>
    %cst_33 = arith.constant 0.000000e+00 : f32
    %102 = vector.broadcast %cst_33 : f32 to vector<64x128xf32>
    %103 = arith.subf %102, %99 : vector<64x128xf32>
    %104 = arith.select %101, %99, %103 : vector<64x128xi1>, vector<64x128xf32>
    %cst_34 = arith.constant 1.000000e+00 : f32
    %105 = vector.broadcast %cst_34 : f32 to vector<64x128xf32>
    %106 = arith.addf %105, %104 : vector<64x128xf32>
    %107 = arith.mulf %54, %106 : vector<64x128xf32>
    %108 = arith.mulf %38, %107 : vector<64x128xf32>
    %c0_35 = arith.constant 0 : index
    %c0_36 = arith.constant 0 : index
    %109 = vector.load %arg5[%c0_35, %c0_36] : memref<64x128xf32, #tpu.memory_space<vmem>>, vector<64x128xf32>
    tpu.vector_store %arg5[%c0_35, %c0_36], %108 {strides = array<i32>} : memref<64x128xf32, #tpu.memory_space<vmem>>, vector<64x128xf32>,
    return
  }
  func.func @transform_0(%arg0: i32) -> (i32, i32) {
    %c0_i32 = arith.constant 0 : i32
    %c0_i32_0 = arith.constant 0 : i32
    return %arg0, %c0_i32 : i32, i32
  }
  func.func @transform_1(%arg0: i32) -> (i32, i32) {
    %c0_i32 = arith.constant 0 : i32
    %c0_i32_0 = arith.constant 0 : i32
    return %arg0, %c0_i32 : i32, i32
  }
  func.func @transform_2(%arg0: i32) -> (i32, i32) {
    %c0_i32 = arith.constant 0 : i32
    %c0_i32_0 = arith.constant 0 : i32
    %c0_i32_1 = arith.constant 0 : i32
    return %c0_i32, %c0_i32_0 : i32, i32
  }
  func.func @transform_3(%arg0: i32) -> (i32, i32) {
    %c0_i32 = arith.constant 0 : i32
    %c0_i32_0 = arith.constant 0 : i32
    %c0_i32_1 = arith.constant 0 : i32
    return %c0_i32, %c0_i32_0 : i32, i32
  }
  func.func @transform_4(%arg0: i32) -> (i32, i32) {
    %c0_i32 = arith.constant 0 : i32
    %c0_i32_0 = arith.constant 0 : i32
    return %arg0, %c0_i32 : i32, i32
  }
}

module attributes {stable_mosaic.version = 11 : i64} {
  func.func @_ffn_kernel(%arg0: i32, %arg1: memref<64x128xf32, #tpu.memory_space<vmem>>, %arg2: memref<64x128xf32, #tpu.memory_space<vmem>>, %arg3: memref<128x384xf32, #tpu.memory_space<vmem>>, %arg4: memref<128x384xf32, #tpu.memory_space<vmem>>, %arg5: memref<64x128xf32, #tpu.memory_space<vmem>>) attributes {dimension_semantics = [#tpu.dimension_semantics<parallel>], iteration_bounds = array<i64: 2>, scalar_prefetch = 0 : i64, scratch_operands = 0 : i64, tpu.core_type = #tpu.core_type<tc>, window_params = [{transform_indices = @transform_0, window_bounds = array<i64: 64, 128>}, {transform_indices = @transform_1, window_bounds = array<i64: 64, 128>}, {pipeline_mode = #tpu.pipeline_mode<synchronous>, transform_indices = @transform_2, window_bounds = array<i64: 128, 384>}, {pipeline_mode = #tpu.pipeline_mode<synchronous>, transform_indices = @transform_3, window_bounds = array<i64: 128, 384>}, {transform_indices = @transform_4, window_bounds = array<i64: 64, 128>}]} {
    %0 = tpu.iota {dimensions = array<i32: 0>} : vector<64x1xi32>
    %c32_i32 = arith.constant 32 : i32
    %c0_i32 = arith.constant 0 : i32
    %1 = arith.cmpi eq, %c32_i32, %c0_i32 : i32
    %c1_i32 = arith.constant 1 : i32
    %2 = arith.select %1, %c1_i32, %c32_i32 : i32
    %3 = vector.broadcast %2 : i32 to vector<64x1xi32>
    %4 = arith.remsi %0, %3 : vector<64x1xi32>
    %c0_i32_0 = arith.constant 0 : i32
    %5 = vector.broadcast %c0_i32_0 : i32 to vector<64x1xi32>
    %6 = arith.cmpi ne, %4, %5 : vector<64x1xi32>
    %c0_i32_1 = arith.constant 0 : i32
    %7 = vector.broadcast %c0_i32_1 : i32 to vector<64x1xi32>
    %8 = arith.cmpi slt, %4, %7 : vector<64x1xi32>
    %c0_i32_2 = arith.constant 0 : i32
    %9 = arith.cmpi slt, %2, %c0_i32_2 : i32
    %10 = vector.broadcast %9 : i1 to vector<64x1xi1>
    %11 = vector.broadcast %10 : vector<64x1xi1> to vector<64x1xi1>
    %12 = arith.xori %8, %11 : vector<64x1xi1>
    %13 = arith.andi %12, %6 : vector<64x1xi1>
    %14 = vector.broadcast %2 : i32 to vector<64x1xi32>
    %15 = arith.addi %4, %14 : vector<64x1xi32>
    %16 = arith.select %13, %15, %4 : vector<64x1xi1>, vector<64x1xi32>
    %c0_i32_3 = arith.constant 0 : i32
    %17 = vector.broadcast %c0_i32_3 : i32 to vector<64x1xi32>
    %18 = arith.cmpi ne, %16, %17 : vector<64x1xi32>
    %19 = arith.extui %18 : vector<64x1xi1> to vector<64x1xi32>
    %20 = arith.sitofp %19 : vector<64x1xi32> to vector<64x1xf32>
    %c31_i32 = arith.constant 31 : i32
    %21 = vector.broadcast %c31_i32 : i32 to vector<64x1xi32>
    %22 = arith.cmpi ne, %16, %21 : vector<64x1xi32>
    %23 = arith.extui %22 : vector<64x1xi1> to vector<64x1xi32>
    %24 = arith.sitofp %23 : vector<64x1xi32> to vector<64x1xf32>
    %c0 = arith.constant 0 : index
    %c0_4 = arith.constant 0 : index
    %25 = vector.load %arg1[%c0, %c0_4] : memref<64x128xf32, #tpu.memory_space<vmem>>, vector<64x128xf32>
    %c0_5 = arith.constant 0 : index
    %c0_6 = arith.constant 0 : index
    %26 = vector.load %arg3[%c0_5, %c0_6] : memref<128x384xf32, #tpu.memory_space<vmem>>, vector<128x384xf32>
    %cst = arith.constant dense<0.000000e+00> : vector<64x384xf32>
    %27 = tpu.matmul %25, %26, %cst {dimension_numbers = #tpu.dot_dimension_numbers<[1], [0], [0], [1], [0, 0, 1, 1], [], []>} : vector<64x128xf32>, vector<128x384xf32>, vector<64x384xf32> -> vector<64x384xf32>
    %28 = vector.extract_strided_slice %27 {offsets = [0, 0], sizes = [64, 128], strides = [1, 1]} : vector<64x384xf32> to vector<64x128xf32>
    %29 = vector.extract_strided_slice %27 {offsets = [0, 128], sizes = [64, 128], strides = [1, 1]} : vector<64x384xf32> to vector<64x128xf32>
    %30 = vector.extract_strided_slice %27 {offsets = [0, 256], sizes = [64, 128], strides = [1, 1]} : vector<64x384xf32> to vector<64x128xf32>
    %c1_i32_7 = arith.constant 1 : i32
    %31 = tpu.dynamic_rotate %28 by %c1_i32_7 dim 0 : vector<64x128xf32>, i32 -> vector<64x128xf32>
    %32 = vector.broadcast %20 : vector<64x1xf32> to vector<64x128xf32>
    %33 = arith.mulf %31, %32 : vector<64x128xf32>
    %34 = arith.addf %29, %33 : vector<64x128xf32>
    %c63_i32 = arith.constant 63 : i32
    %35 = tpu.dynamic_rotate %30 by %c63_i32 dim 0 : vector<64x128xf32>, i32 -> vector<64x128xf32>
    %36 = vector.broadcast %24 : vector<64x1xf32> to vector<64x128xf32>
    %37 = arith.mulf %35, %36 : vector<64x128xf32>
    %38 = arith.addf %34, %37 : vector<64x128xf32>
    %c0_8 = arith.constant 0 : index
    %c0_9 = arith.constant 0 : index
    %39 = vector.load %arg2[%c0_8, %c0_9] : memref<64x128xf32, #tpu.memory_space<vmem>>, vector<64x128xf32>
    %c0_10 = arith.constant 0 : index
    %c0_11 = arith.constant 0 : index
    %40 = vector.load %arg4[%c0_10, %c0_11] : memref<128x384xf32, #tpu.memory_space<vmem>>, vector<128x384xf32>
    %cst_12 = arith.constant dense<0.000000e+00> : vector<64x384xf32>
    %41 = tpu.matmul %39, %40, %cst_12 {dimension_numbers = #tpu.dot_dimension_numbers<[1], [0], [0], [1], [0, 0, 1, 1], [], []>} : vector<64x128xf32>, vector<128x384xf32>, vector<64x384xf32> -> vector<64x384xf32>
    %42 = vector.extract_strided_slice %41 {offsets = [0, 0], sizes = [64, 128], strides = [1, 1]} : vector<64x384xf32> to vector<64x128xf32>
    %43 = vector.extract_strided_slice %41 {offsets = [0, 128], sizes = [64, 128], strides = [1, 1]} : vector<64x384xf32> to vector<64x128xf32>
    %44 = vector.extract_strided_slice %41 {offsets = [0, 256], sizes = [64, 128], strides = [1, 1]} : vector<64x384xf32> to vector<64x128xf32>
    %c1_i32_13 = arith.constant 1 : i32
    %45 = tpu.dynamic_rotate %42 by %c1_i32_13 dim 0 : vector<64x128xf32>, i32 -> vector<64x128xf32>
    %46 = vector.broadcast %20 : vector<64x1xf32> to vector<64x128xf32>
    %47 = arith.mulf %45, %46 : vector<64x128xf32>
    %48 = arith.addf %43, %47 : vector<64x128xf32>
    %c63_i32_14 = arith.constant 63 : i32
    %49 = tpu.dynamic_rotate %44 by %c63_i32_14 dim 0 : vector<64x128xf32>, i32 -> vector<64x128xf32>
    %50 = vector.broadcast %24 : vector<64x1xf32> to vector<64x128xf32>
    %51 = arith.mulf %49, %50 : vector<64x128xf32>
    %52 = arith.addf %48, %51 : vector<64x128xf32>
    %cst_15 = arith.constant 5.000000e-01 : f32
    %53 = vector.broadcast %cst_15 : f32 to vector<64x128xf32>
    %54 = arith.mulf %53, %52 : vector<64x128xf32>
    %cst_16 = arith.constant 0.707106769 : f32
    %55 = vector.broadcast %cst_16 : f32 to vector<64x128xf32>
    %56 = arith.mulf %52, %55 : vector<64x128xf32>
    %57 = math.absf %56 : vector<64x128xf32>
    %cst_17 = arith.constant 5.000000e-01 : f32
    %58 = vector.broadcast %cst_17 : f32 to vector<64x128xf32>
    %59 = arith.mulf %58, %57 : vector<64x128xf32>
    %cst_18 = arith.constant 1.000000e+00 : f32
    %60 = vector.broadcast %cst_18 : f32 to vector<64x128xf32>
    %61 = arith.addf %60, %59 : vector<64x128xf32>
    %cst_19 = arith.constant 1.000000e+00 : f32
    %62 = vector.broadcast %cst_19 : f32 to vector<64x128xf32>
    %63 = arith.divf %62, %61 : vector<64x128xf32>
    %cst_20 = arith.constant 0.170872763 : f32
    %64 = vector.broadcast %cst_20 : f32 to vector<64x128xf32>
    %65 = arith.mulf %63, %64 : vector<64x128xf32>
    %cst_21 = arith.constant -0.822152256 : f32
    %66 = vector.broadcast %cst_21 : f32 to vector<64x128xf32>
    %67 = arith.addf %66, %65 : vector<64x128xf32>
    %68 = arith.mulf %63, %67 : vector<64x128xf32>
    %cst_22 = arith.constant 1.48851585 : f32
    %69 = vector.broadcast %cst_22 : f32 to vector<64x128xf32>
    %70 = arith.addf %69, %68 : vector<64x128xf32>
    %71 = arith.mulf %63, %70 : vector<64x128xf32>
    %cst_23 = arith.constant -1.13520396 : f32
    %72 = vector.broadcast %cst_23 : f32 to vector<64x128xf32>
    %73 = arith.addf %72, %71 : vector<64x128xf32>
    %74 = arith.mulf %63, %73 : vector<64x128xf32>
    %cst_24 = arith.constant 0.278868079 : f32
    %75 = vector.broadcast %cst_24 : f32 to vector<64x128xf32>
    %76 = arith.addf %75, %74 : vector<64x128xf32>
    %77 = arith.mulf %63, %76 : vector<64x128xf32>
    %cst_25 = arith.constant -0.186288059 : f32
    %78 = vector.broadcast %cst_25 : f32 to vector<64x128xf32>
    %79 = arith.addf %78, %77 : vector<64x128xf32>
    %80 = arith.mulf %63, %79 : vector<64x128xf32>
    %cst_26 = arith.constant 0.0967841818 : f32
    %81 = vector.broadcast %cst_26 : f32 to vector<64x128xf32>
    %82 = arith.addf %81, %80 : vector<64x128xf32>
    %83 = arith.mulf %63, %82 : vector<64x128xf32>
    %cst_27 = arith.constant 0.374091953 : f32
    %84 = vector.broadcast %cst_27 : f32 to vector<64x128xf32>
    %85 = arith.addf %84, %83 : vector<64x128xf32>
    %86 = arith.mulf %63, %85 : vector<64x128xf32>
    %cst_28 = arith.constant 1.00002372 : f32
    %87 = vector.broadcast %cst_28 : f32 to vector<64x128xf32>
    %88 = arith.addf %87, %86 : vector<64x128xf32>
    %89 = arith.mulf %63, %88 : vector<64x128xf32>
    %cst_29 = arith.constant -1.26551223 : f32
    %90 = vector.broadcast %cst_29 : f32 to vector<64x128xf32>
    %91 = arith.addf %90, %89 : vector<64x128xf32>
    %cst_30 = arith.constant 0.000000e+00 : f32
    %92 = vector.broadcast %cst_30 : f32 to vector<64x128xf32>
    %93 = arith.subf %92, %57 : vector<64x128xf32>
    %94 = arith.mulf %93, %57 : vector<64x128xf32>
    %95 = arith.addf %94, %91 : vector<64x128xf32>
    %96 = math.exp %95 : vector<64x128xf32>
    %97 = arith.mulf %63, %96 : vector<64x128xf32>
    %cst_31 = arith.constant 1.000000e+00 : f32
    %98 = vector.broadcast %cst_31 : f32 to vector<64x128xf32>
    %99 = arith.subf %98, %97 : vector<64x128xf32>
    %cst_32 = arith.constant 0.000000e+00 : f32
    %100 = vector.broadcast %cst_32 : f32 to vector<64x128xf32>
    %101 = arith.cmpf oge, %56, %100 : vector<64x128xf32>
    %cst_33 = arith.constant 0.000000e+00 : f32
    %102 = vector.broadcast %cst_33 : f32 to vector<64x128xf32>
    %103 = arith.subf %102, %99 : vector<64x128xf32>
    %104 = arith.select %101, %99, %103 : vector<64x128xi1>, vector<64x128xf32>
    %cst_34 = arith.constant 1.000000e+00 : f32
    %105 = vector.broadcast %cst_34 : f32 to vector<64x128xf32>
    %106 = arith.addf %105, %104 : vector<64x128xf32>
    %107 = arith.mulf %54, %106 : vector<64x128xf32>
    %108 = arith.mulf %38, %107 : vector<64x128xf32>
    %c0_35 = arith.constant 0 : index
    %c0_36 = arith.constant 0 : index
    %109 = vector.load %arg5[%c0_35, %c0_36] : memref<64x128xf32, #tpu.memory_space<vmem>>, vector<64x128xf32>
    tpu.vector_store %arg5[%c0_35, %c0_36], %108 {strides = array<i32>} : memref<64x128xf32, #tpu.memory_space<vmem>>, vector<64x128xf32>,
    return
  }
  func.func @transform_0(%arg0: i32) -> (i32, i32) {
    %c0_i32 = arith.constant 0 : i32
    %c0_i32_0 = arith.constant 0 : i32
    return %arg0, %c0_i32 : i32, i32
  }
  func.func @transform_1(%arg0: i32) -> (i32, i32) {
    %c0_i32 = arith.constant 0 : i32
    %c0_i32_0 = arith.constant 0 : i32
    return %arg0, %c0_i32 : i32, i32
  }
  func.func @transform_2(%arg0: i32) -> (i32, i32) {
    %c0_i32 = arith.constant 0 : i32
    %c0_i32_0 = arith.constant 0 : i32
    %c0_i32_1 = arith.constant 0 : i32
    return %c0_i32, %c0_i32_0 : i32, i32
  }
  func.func @transform_3(%arg0: i32) -> (i32, i32) {
    %c0_i32 = arith.constant 0 : i32
    %c0_i32_0 = arith.constant 0 : i32
    %c0_i32_1 = arith.constant 0 : i32
    return %c0_i32, %c0_i32_0 : i32, i32
  }
  func.func @transform_4(%arg0: i32) -> (i32, i32) {
    %c0_i32 = arith.constant 0 : i32
    %c0_i32_0 = arith.constant 0 : i32
    return %arg0, %c0_i32 : i32, i32
  }
}

</mosaic_0001>

<bundles_post_ra>
// kernel: cross_spatial_ffn.1
= control target key start
LH: loop header
LB: loop body
LE: loop exit
PB: predicated region body
PF: predicated region fallthrough
CT: control target
= control target key end

     0   :  { %s1472_s15 = smov 0   ;;  %s2319_s0 = inlined_call_operand.vmem [shape: f32[128,128], index: 0, kind: input, shape index: {}]   ;;  %s2320_s1 = inlined_call_operand.vmem [shape: f32[128,128], index: 1, kind: input, shape index: {}]   ;;  %s2321_s2 = inlined_call_operand.vmem [shape: f32[128,384], index: 2, kind: input, shape index: {}]   ;;  %s2322_s3 = inlined_call_operand.vmem [shape: f32[128,384], index: 3, kind: input, shape index: {}]   ;;  %s2323_s4 = inlined_call_operand.vmem [shape: f32[128,128], index: 4, kind: output, shape index: {}]  }
   0x1 LB: > { %s1348_s16 = sadd.s32 4294967295, %s1444_s15   ;;  %p1352_p0 = scmp.ge.s32.totalorder %s1444_s15, 1  ;;  %s1444_s15 = sphi %s1472_s15, %s14_s15  }
   0x2   : > { %p174_p1 = scmp.lt.s32.totalorder %s1444_s15, 3 }
   0x4   : > { %p175_p2 = pnand %p1352_p0, %p174_p1 }
   0x5   : > { %s1353_s25 = sshll.u32 (!%p175_p2), %s1348_s16, 3 }
   0x6   : > { %178 = sbr.rel (%p175_p2) target bundleno = 394 (0x18a), region = 36  ;;  %p206_p3 = scmp.lt.s32.totalorder (!%p175_p2), %s1353_s25, 15 }
   0xb   : > { %v429_v0 = vld [vmem:[%s2321_s2 + $0x168] sm:$0xff]  ;;  %v430_v1 = vld [vmem:[%s2321_s2 + $0x170] sm:$0xff]  ;;  %v427_v3 = vld [vmem:[%s2321_s2 + $0x158] sm:$0xff]  ;;  %s2330_s25 = smov (!%p206_p3, %s1353_s25), 15 }
   0xc   : > { %v426_v2 = vld [vmem:[%s2321_s2 + $0x150] sm:$0xff]  ;;  %432 = vmatpush.msra.mxu0 %v429_v0  ;;  %1365 = vmatpush.msra.mxu2 %v429_v0  ;;  %v423_v4 = vld [vmem:[%s2321_s2 + $0x138] sm:$0xff]  ;;  %v424_v5 = vld [vmem:[%s2321_s2 + $0x140] sm:$0xff]  ;;  %s1563_s23 = sshll.u32 %s2330_s25, 3 }
   0xd   : > { %473 = vmatpush.msra.mxu1 %v430_v1  ;;  %1381 = vmatpush.msra.mxu3 %v430_v1  ;;  %v420_v6 = vld [vmem:[%s2321_s2 + $0x120] sm:$0xff]  ;;  %v421_v7 = vld [vmem:[%s2321_s2 + $0x128] sm:$0xff]  ;;  %v418_v9 = vld [vmem:[%s2321_s2 + $0x110] sm:$0xff]  ;;  %s1578_s16 = scalar_lea.vmem %s2319_s0, %s1563_s23  ;;  %s1798_s8 = scalar_lea.vmem %s2320_s1, %s1563_s23 }
   0xe   : > { %433 = vmatpush.msra.mxu0 %v426_v2  ;;  %1366 = vmatpush.msra.mxu2 %v426_v2  ;;  %v417_v8 = vld [vmem:[%s2321_s2 + $0x108] sm:$0xff]  ;;  %v414_v10 = vld [vmem:[%s2321_s2 + $0xf0] sm:$0xff]  ;;  %v415_v11 = vld [vmem:[%s2321_s2 + $0xf8] sm:$0xff]  ;;  %s2219_s30 = scalar_lea.vmem %s2323_s4, %s1563_s23 }
   0xf   : > { %474 = vmatpush.msra.mxu1 %v427_v3  ;;  %1382 = vmatpush.msra.mxu3 %v427_v3  ;;  %v411_v12 = vld [vmem:[%s2321_s2 + $0xd8] sm:$0xff]  ;;  %v412_v13 = vld [vmem:[%s2321_s2 + $0xe0] sm:$0xff]  ;;  %v409_v15 = vld [vmem:[%s2321_s2 + $0xc8] sm:$0xff] }
  0x10   : > { %434 = vmatpush.msra.mxu0 %v423_v4  ;;  %1367 = vmatpush.msra.mxu2 %v423_v4  ;;  %v408_v14 = vld [vmem:[%s2321_s2 + $0xc0] sm:$0xff]  ;;  %v405_v16 = vld [vmem:[%s2321_s2 + $0xa8] sm:$0xff]  ;;  %v406_v17 = vld [vmem:[%s2321_s2 + $0xb0] sm:$0xff] }
  0x11   : > { %475 = vmatpush.msra.mxu1 %v424_v5  ;;  %1383 = vmatpush.msra.mxu3 %v424_v5  ;;  %v402_v18 = vld [vmem:[%s2321_s2 + $0x90] sm:$0xff]  ;;  %v403_v19 = vld [vmem:[%s2321_s2 + $0x98] sm:$0xff]  ;;  %v400_v21 = vld [vmem:[%s2321_s2 + $0x80] sm:$0xff] }
  0x12   : > { %435 = vmatpush.msra.mxu0 %v420_v6  ;;  %1368 = vmatpush.msra.mxu2 %v420_v6  ;;  %v399_v20 = vld [vmem:[%s2321_s2 + $0x78] sm:$0xff]  ;;  %v396_v22 = vld [vmem:[%s2321_s2 + $0x60] sm:$0xff]  ;;  %v397_v23 = vld [vmem:[%s2321_s2 + $0x68] sm:$0xff] }
  0x13   : > { %476 = vmatpush.msra.mxu1 %v421_v7  ;;  %1384 = vmatpush.msra.mxu3 %v421_v7  ;;  %v393_v24 = vld [vmem:[%s2321_s2 + $0x48] sm:$0xff]  ;;  %v394_v25 = vld [vmem:[%s2321_s2 + $0x50] sm:$0xff]  ;;  %v391_v27 = vld [vmem:[%s2321_s2 + $0x38] sm:$0xff] }
  0x14   : > { %436 = vmatpush.msra.mxu0 %v417_v8  ;;  %1369 = vmatpush.msra.mxu2 %v417_v8  ;;  %v390_v26 = vld [vmem:[%s2321_s2 + $0x30] sm:$0xff]  ;;  %v387_v28 = vld [vmem:[%s2321_s2 + $0x18] sm:$0xff]  ;;  %v388_v29 = vld [vmem:[%s2321_s2 + $0x20] sm:$0xff] }
  0x15   : > { %477 = vmatpush.msra.mxu1 %v418_v9  ;;  %1385 = vmatpush.msra.mxu3 %v418_v9  ;;  %v384_v30 = vld [vmem:[%s2321_s2] sm:$0xff]  ;;  %v385_v31 = vld [vmem:[%s2321_s2 + $0x8] sm:$0xff]  ;;  %v431_v35 = vld [vmem:[%s2321_s2 + $0x178] sm:$0xff] }
  0x16   : > { %437 = vmatpush.msra.mxu0 %v414_v10  ;;  %1370 = vmatpush.msra.mxu2 %v414_v10  ;;  %v1587_v32 = vld [vmem:[%s1578_s16] sm:$0xff]  ;;  %v674_v34 = vld [vmem:[%s2322_s3 + $0x168] sm:$0xff]  ;;  %v676_v36 = vld [vmem:[%s2322_s3 + $0x178] sm:$0xff] }
  0x17   : > { %478 = vmatpush.msra.mxu1 %v415_v11  ;;  %1386 = vmatpush.msra.mxu3 %v415_v11  ;;  %v1590_v33 = vld [vmem:[%s1578_s16 + $0x20] sm:$0xff]  ;;  %v675_v37 = vld [vmem:[%s2322_s3 + $0x170] sm:$0xff]  ;;  %v672_v41 = vld [vmem:[%s2322_s3 + $0x158] sm:$0xff] }
  0x18   : > { %438 = vmatpush.msra.mxu0 %v411_v12  ;;  %1371 = vmatpush.msra.mxu2 %v411_v12  ;;  %v671_v38 = vld [vmem:[%s2322_s3 + $0x150] sm:$0xff]  ;;  %v428_v39 = vld [vmem:[%s2321_s2 + $0x160] sm:$0xff]  ;;  %v668_v42 = vld [vmem:[%s2322_s3 + $0x138] sm:$0xff] }
  0x19   : > { %479 = vmatpush.msra.mxu1 %v412_v13  ;;  %1387 = vmatpush.msra.mxu3 %v412_v13  ;;  %v673_v40 = vld [vmem:[%s2322_s3 + $0x160] sm:$0xff]  ;;  %v425_v43 = vld [vmem:[%s2321_s2 + $0x148] sm:$0xff]  ;;  %v422_v47 = vld [vmem:[%s2321_s2 + $0x130] sm:$0xff] }
  0x1a   : > { %439 = vmatpush.msra.mxu0 %v408_v14  ;;  %1372 = vmatpush.msra.mxu2 %v408_v14  ;;  %v670_v44 = vld [vmem:[%s2322_s3 + $0x148] sm:$0xff]  ;;  %v669_v45 = vld [vmem:[%s2322_s3 + $0x140] sm:$0xff]  ;;  %v667_v48 = vld [vmem:[%s2322_s3 + $0x130] sm:$0xff] }
  0x1b   : > { %480 = vmatpush.msra.mxu1 %v409_v15  ;;  %1388 = vmatpush.msra.mxu3 %v409_v15  ;;  %v665_v46 = vld [vmem:[%s2322_s3 + $0x120] sm:$0xff]  ;;  %v1642_v49 = vld [vmem:[%s1578_s16 + $0x8] sm:$0xff]  ;;  %v419_v51 = vld [vmem:[%s2321_s2 + $0x118] sm:$0xff] }
  0x1c   : > { %440 = vmatpush.msra.mxu0 %v405_v16  ;;  %1373 = vmatpush.msra.mxu2 %v405_v16  ;;  %v1645_v50 = vld [vmem:[%s1578_s16 + $0x28] sm:$0xff]  ;;  %v664_v53 = vld [vmem:[%s2322_s3 + $0x118] sm:$0xff]  ;;  %v416_v54 = vld [vmem:[%s2321_s2 + $0x100] sm:$0xff] }
  0x1d   : > { %481 = vmatpush.msra.mxu1 %v406_v17  ;;  %1389 = vmatpush.msra.mxu3 %v406_v17  ;;  %v662_v52 = vld [vmem:[%s2322_s3 + $0x108] sm:$0xff]  ;;  %v659_v56 = vld [vmem:[%s2322_s3 + $0xf0] sm:$0xff]  ;;  %v661_v57 = vld [vmem:[%s2322_s3 + $0x100] sm:$0xff] }
  0x1e   : > { %441 = vmatpush.msra.mxu0 %v402_v18  ;;  %1374 = vmatpush.msra.mxu2 %v402_v18  ;;  %v666_v55 = vld [vmem:[%s2322_s3 + $0x128] sm:$0xff]  ;;  %v663_v59 = vld [vmem:[%s2322_s3 + $0x110] sm:$0xff]  ;;  %v656_v60 = vld [vmem:[%s2322_s3 + $0xd8] sm:$0xff] }
  0x1f   : > { %482 = vmatpush.msra.mxu1 %v403_v19  ;;  %1390 = vmatpush.msra.mxu3 %v403_v19  ;;  %v413_v58 = vld [vmem:[%s2321_s2 + $0xe8] sm:$0xff]  ;;  %v410_v62 = vld [vmem:[%s2321_s2 + $0xd0] sm:$0xff]  ;;  %v653_v0 = vld [vmem:[%s2322_s3 + $0xc0] sm:$0xff] }
  0x20   : > { %442 = vmatpush.msra.mxu0 %v399_v20  ;;  %1375 = vmatpush.msra.mxu2 %v399_v20  ;;  %v658_v61 = vld [vmem:[%s2322_s3 + $0xe8] sm:$0xff]  ;;  %v1688_v63 = vld [vmem:[%s1578_s16 + $0x10] sm:$0xff]  ;;  %v407_v3 = vld [vmem:[%s2321_s2 + $0xb8] sm:$0xff] }
  0x21   : > { %483 = vmatpush.msra.mxu1 %v400_v21  ;;  %1391 = vmatpush.msra.mxu3 %v400_v21  ;;  %v655_v1 = vld [vmem:[%s2322_s3 + $0xd0] sm:$0xff]  ;;  %v650_v4 = vld [vmem:[%s2322_s3 + $0xa8] sm:$0xff]  ;;  %v652_v5 = vld [vmem:[%s2322_s3 + $0xb8] sm:$0xff] }
  0x22   : > { %443 = vmatpush.msra.mxu0 %v396_v22  ;;  %1376 = vmatpush.msra.mxu2 %v396_v22  ;;  %v1697_v2 = vld [vmem:[%s1578_s16 + $0x30] sm:$0xff]  ;;  %v404_v6 = vld [vmem:[%s2321_s2 + $0xa0] sm:$0xff]  ;;  %v660_v7 = vld [vmem:[%s2322_s3 + $0xf8] sm:$0xff] }
  0x23   : > { %484 = vmatpush.msra.mxu1 %v397_v23  ;;  %1392 = vmatpush.msra.mxu3 %v397_v23  ;;  %v647_v8 = vld [vmem:[%s2322_s3 + $0x90] sm:$0xff]  ;;  %v649_v9 = vld [vmem:[%s2322_s3 + $0xa0] sm:$0xff]  ;;  %v401_v10 = vld [vmem:[%s2321_s2 + $0x88] sm:$0xff] }
  0x24   : > { %444 = vmatpush.msra.mxu0 %v393_v24  ;;  %1377 = vmatpush.msra.mxu2 %v393_v24  ;;  %v657_v11 = vld [vmem:[%s2322_s3 + $0xe0] sm:$0xff]  ;;  %v644_v12 = vld [vmem:[%s2322_s3 + $0x78] sm:$0xff]  ;;  %v646_v13 = vld [vmem:[%s2322_s3 + $0x88] sm:$0xff] }
  0x25   : > { %485 = vmatpush.msra.mxu1 %v394_v25  ;;  %1393 = vmatpush.msra.mxu3 %v394_v25  ;;  %v398_v14 = vld [vmem:[%s2321_s2 + $0x70] sm:$0xff]  ;;  %v1740_v15 = vld [vmem:[%s1578_s16 + $0x18] sm:$0xff]  ;;  %v641_v16 = vld [vmem:[%s2322_s3 + $0x60] sm:$0xff] }
  0x26   : > { %445 = vmatpush.msra.mxu0 %v390_v26  ;;  %1378 = vmatpush.msra.mxu2 %v390_v26  ;;  %v643_v17 = vld [vmem:[%s2322_s3 + $0x70] sm:$0xff]  ;;  %v1749_v18 = vld [vmem:[%s1578_s16 + $0x38] sm:$0xff]  ;;  %v654_v19 = vld [vmem:[%s2322_s3 + $0xc8] sm:$0xff] }
  0x27   : > { %486 = vmatpush.msra.mxu1 %v391_v27  ;;  %1394 = vmatpush.msra.mxu3 %v391_v27  ;;  %v638_v20 = vld [vmem:[%s2322_s3 + $0x48] sm:$0xff]  ;;  %v395_v21 = vld [vmem:[%s2321_s2 + $0x58] sm:$0xff]  ;;  %v651_v23 = vld [vmem:[%s2322_s3 + $0xb0] sm:$0xff] }
  0x28   : > { %446 = vmatpush.msra.mxu0 %v387_v28  ;;  %1379 = vmatpush.msra.mxu2 %v387_v28  ;;  %v640_v22 = vld [vmem:[%s2322_s3 + $0x58] sm:$0xff]  ;;  %v635_v24 = vld [vmem:[%s2322_s3 + $0x30] sm:$0xff]  ;;  %v392_v25 = vld [vmem:[%s2321_s2 + $0x40] sm:$0xff] }
  0x29   : > { %487 = vmatpush.msra.mxu1 %v388_v29  ;;  %1395 = vmatpush.msra.mxu3 %v388_v29  ;;  %v637_v26 = vld [vmem:[%s2322_s3 + $0x40] sm:$0xff]  ;;  %v648_v27 = vld [vmem:[%s2322_s3 + $0x98] sm:$0xff]  ;;  %v389_v29 = vld [vmem:[%s2321_s2 + $0x28] sm:$0xff] }
  0x2a   : > { %447 = vmatpush.msra.mxu0 %v384_v30  ;;  %1380 = vmatpush.msra.mxu2 %v384_v30  ;;  %v632_v28 = vld [vmem:[%s2322_s3 + $0x18] sm:$0xff]  ;;  %v634_v30 = vld [vmem:[%s2322_s3 + $0x28] sm:$0xff] }
  0x2b   : > { %488 = vmatpush.msra.mxu1 %v385_v31  ;;  %1396 = vmatpush.msra.mxu3 %v385_v31  ;;  %v645_v31 = vld [vmem:[%s2322_s3 + $0x80] sm:$0xff] }
  0x2c   : > { %448 = vmatmul.f32.vlgmr.msra.gmra.mxu0 %v1587_v32  ;;  %460 = vmatmul.f32.vlgmr.msra.gmra.mxu2 %v1590_v33 }
  0x2d   : > { %489 = vmatmul.f32.vlgmr.msra.gmra.mxu1 %v1587_v32  ;;  %501 = vmatmul.f32.vlgmr.msra.gmra.mxu3 %v1590_v33 }
  0x2e   : > { %677 = vmatpush.msrb.mxu3 %v674_v34  ;;  %514 = vmatpush.msrb.mxu2 %v431_v35  ;;  %v629_v34 = vld [vmem:[%s2322_s3] sm:$0xff]  ;;  %v386_v35 = vld [vmem:[%s2321_s2 + $0x10] sm:$0xff] }
  0x2f   : > { %759 = vmatpush.msrb.mxu1 %v676_v36  ;;  %718 = vmatpush.msrb.mxu0 %v675_v37  ;;  %v631_v36 = vld [vmem:[%s2322_s3 + $0x10] sm:$0xff]  ;;  %v621_v37 = vld [vmem:[%s1798_s8] sm:$0xff] }
  0x30   : > { %678 = vmatpush.msrb.mxu3 %v671_v38  ;;  %515 = vmatpush.msrb.mxu2 %v428_v39  ;;  %v642_v38 = vld [vmem:[%s2322_s3 + $0x68] sm:$0xff]  ;;  %v639_v39 = vld [vmem:[%s2322_s3 + $0x50] sm:$0xff] }
  0x31   : > { %760 = vmatpush.msrb.mxu1 %v673_v40  ;;  %719 = vmatpush.msrb.mxu0 %v672_v41  ;;  %v636_v40 = vld [vmem:[%s2322_s3 + $0x38] sm:$0xff]  ;;  %v633_v41 = vld [vmem:[%s2322_s3 + $0x20] sm:$0xff] }
  0x32   : > { %679 = vmatpush.msrb.mxu3 %v668_v42  ;;  %516 = vmatpush.msrb.mxu2 %v425_v43  ;;  %v630_v42 = vld [vmem:[%s2322_s3 + $0x8] sm:$0xff]  ;;  %v623_v43 = vld [vmem:[%s1798_s8 + $0x10] sm:$0xff] }
  0x33   : > { %761 = vmatpush.msrb.mxu1 %v670_v44  ;;  %720 = vmatpush.msrb.mxu0 %v669_v45  ;;  %v624_v44 = vld [vmem:[%s1798_s8 + $0x18] sm:$0xff]  ;;  %v625_v45 = vld [vmem:[%s1798_s8 + $0x20] sm:$0xff] }
  0x34   : > { %680 = vmatpush.msrb.mxu3 %v665_v46  ;;  %517 = vmatpush.msrb.mxu2 %v422_v47  ;;  %v626_v46 = vld [vmem:[%s1798_s8 + $0x28] sm:$0xff]  ;;  %v627_v47 = vld [vmem:[%s1798_s8 + $0x30] sm:$0xff] }
  0x35   : > { %762 = vmatpush.msrb.mxu1 %v667_v48  ;;  %451 = vmatmul.f32.gmra.mxu0 %v1642_v49  ;;  %v628_v48 = vld [vmem:[%s1798_s8 + $0x38] sm:$0xff] }
  0x36   : > { %463 = vmatmul.f32.gmra.mxu2 %v1645_v50  ;;  %492 = vmatmul.f32.gmra.mxu1 %v1642_v49 }
  0x37   : > { %504 = vmatmul.f32.gmra.mxu3 %v1645_v50  ;;  %518 = vmatpush.msrb.mxu2 %v419_v51  ;;  %v223_v51 = vlaneseq }
  0x38   : > { %681 = vmatpush.msrb.mxu3 %v662_v52  ;;  %763 = vmatpush.msrb.mxu1 %v664_v53 }
  0x39   : > { %519 = vmatpush.msrb.mxu2 %v416_v54  ;;  %721 = vmatpush.msrb.mxu0 %v666_v55 }
  0x3a   : > { %682 = vmatpush.msrb.mxu3 %v659_v56  ;;  %764 = vmatpush.msrb.mxu1 %v661_v57 }
  0x3b   : > { %520 = vmatpush.msrb.mxu2 %v413_v58  ;;  %722 = vmatpush.msrb.mxu0 %v663_v59 }
  0x3c   : > { %683 = vmatpush.msrb.mxu3 %v656_v60  ;;  %765 = vmatpush.msrb.mxu1 %v658_v61 }
  0x3d   : > { %521 = vmatpush.msrb.mxu2 %v410_v62  ;;  %454 = vmatmul.f32.gmra.mxu0 %v1688_v63 }
  0x3e   : > { %684 = vmatpush.msrb.mxu3 %v653_v0  ;;  %766 = vmatpush.msrb.mxu1 %v655_v1 }
  0x3f   : > { %466 = vmatmul.f32.gmra.mxu2 %v1697_v2  ;;  %495 = vmatmul.f32.gmra.mxu1 %v1688_v63 }
  0x40   : > { %507 = vmatmul.f32.gmra.mxu3 %v1697_v2  ;;  %522 = vmatpush.msrb.mxu2 %v407_v3 }
  0x41   : > { %685 = vmatpush.msrb.mxu3 %v650_v4  ;;  %767 = vmatpush.msrb.mxu1 %v652_v5 }
  0x42   : > { %523 = vmatpush.msrb.mxu2 %v404_v6  ;;  %723 = vmatpush.msrb.mxu0 %v660_v7 }
  0x43   : > { %686 = vmatpush.msrb.mxu3 %v647_v8  ;;  %768 = vmatpush.msrb.mxu1 %v649_v9 }
  0x44   : > { %524 = vmatpush.msrb.mxu2 %v401_v10  ;;  %724 = vmatpush.msrb.mxu0 %v657_v11 }
  0x45   : > { %687 = vmatpush.msrb.mxu3 %v644_v12  ;;  %769 = vmatpush.msrb.mxu1 %v646_v13 }
  0x46   : > { %525 = vmatpush.msrb.mxu2 %v398_v14  ;;  %457 = vmatmul.f32.gmra.mxu0 %v1740_v15  ;;  %v1446_v14 = vmov 0.0  }
  0x47   : > { %688 = vmatpush.msrb.mxu3 %v641_v16  ;;  %770 = vmatpush.msrb.mxu1 %v643_v17 }
  0x48   : > { %469 = vmatmul.f32.gmra.mxu2 %v1749_v18  ;;  %498 = vmatmul.f32.gmra.mxu1 %v1740_v15 }
  0x49   : > { %510 = vmatmul.f32.gmra.mxu3 %v1749_v18  ;;  %725 = vmatpush.msrb.mxu0 %v654_v19 }
  0x4a   : > { %689 = vmatpush.msrb.mxu3 %v638_v20  ;;  %526 = vmatpush.msrb.mxu2 %v395_v21 }
  0x4b   : > { %771 = vmatpush.msrb.mxu1 %v640_v22  ;;  %726 = vmatpush.msrb.mxu0 %v651_v23 }
  0x4c   : > { %690 = vmatpush.msrb.mxu3 %v635_v24  ;;  %527 = vmatpush.msrb.mxu2 %v392_v25 }
  0x4d   : > { %772 = vmatpush.msrb.mxu1 %v637_v26  ;;  %727 = vmatpush.msrb.mxu0 %v648_v27 }
  0x4e   : > { %691 = vmatpush.msrb.mxu3 %v632_v28  ;;  %528 = vmatpush.msrb.mxu2 %v389_v29 }
  0x4f   : > { %773 = vmatpush.msrb.mxu1 %v634_v30  ;;  %728 = vmatpush.msrb.mxu0 %v645_v31 }
  0x50   : > { %692 = vmatpush.msrb.mxu3 %v629_v34  ;;  %529 = vmatpush.msrb.mxu2 %v386_v35 }
  0x51   : > { %774 = vmatpush.msrb.mxu1 %v631_v36  ;;  %530 = vmatmul.f32.vlgmr.msrb.gmra.mxu2 %v1587_v32  ;;  %v622_v32 = vld [vmem:[%s1798_s8 + $0x8] sm:$0xff] }
  0x52   : > { %693 = vmatmul.f32.vlgmr.msrb.gmra.mxu3 %v621_v37  ;;  %729 = vmatpush.msrb.mxu0 %v642_v38 }
  0x53   : > { %775 = vmatmul.f32.vlgmr.msrb.gmra.mxu1 %v621_v37 }
  0x54   : > { %730 = vmatpush.msrb.mxu0 %v639_v39 }
  0x56   : > { %731 = vmatpush.msrb.mxu0 %v636_v40 }
  0x58   : > { %732 = vmatpush.msrb.mxu0 %v633_v41 }
  0x59   : > { %533 = vmatmul.f32.gmra.mxu2 %v1642_v49 }
  0x5a   : > { %696 = vmatmul.f32.gmra.mxu3 %v622_v32  ;;  %733 = vmatpush.msrb.mxu0 %v630_v42 }
  0x5b   : > { %778 = vmatmul.f32.gmra.mxu1 %v622_v32  ;;  %734 = vmatmul.f32.vlgmr.msrb.gmra.mxu0 %v621_v37 }
  0x61   : > { %536 = vmatmul.f32.gmra.mxu2 %v1688_v63 }
  0x62   : > { %699 = vmatmul.f32.gmra.mxu3 %v623_v43 }
  0x63   : > { %781 = vmatmul.f32.gmra.mxu1 %v623_v43  ;;  %737 = vmatmul.f32.gmra.mxu0 %v622_v32 }
  0x69   : > { %539 = vmatmul.f32.gmra.mxu2 %v1740_v15 }
  0x6a   : > { %702 = vmatmul.f32.gmra.mxu3 %v624_v44 }
  0x6b   : > { %784 = vmatmul.f32.gmra.mxu1 %v624_v44  ;;  %740 = vmatmul.f32.gmra.mxu0 %v623_v43 }
  0x71   : > { %542 = vmatmul.f32.gmra.mxu2 %v1590_v33 }
  0x72   : > { %705 = vmatmul.f32.gmra.mxu3 %v625_v45 }
  0x73   : > { %787 = vmatmul.f32.gmra.mxu1 %v625_v45  ;;  %743 = vmatmul.f32.gmra.mxu0 %v624_v44 }
  0x79   : > { %545 = vmatmul.f32.gmra.mxu2 %v1645_v50  ;;  %v1840_v50 = vshrl.u32 %v223_v51, 7 }
  0x7a   : > { %708 = vmatmul.f32.gmra.mxu3 %v626_v46 }
  0x7b   : > { %790 = vmatmul.f32.gmra.mxu1 %v626_v46  ;;  %746 = vmatmul.f32.gmra.mxu0 %v625_v45  ;;  %vm563_vm0 = vcmp.lt.s32.totalorder %v1840_v50, 1  ;;  %v228_v62 = vadd.s32 32, %v1840_v50  ;;  %v236_v17 = vand.u32 31, %v1840_v50  ;;  %vm596_vm3 = vcmp.lt.s32.totalorder %v1840_v50, 7 }
  0x7d   : > { %v264_v7 = vand.u32 31, %v228_v62  ;;  %vm328_vm2 = vcmp.ne.s32.totalorder %v236_v17, 0 }
  0x7e   : > { %v1874_v26 = vsel %vm328_vm2, 1.0, %v1446_v14 }
  0x7f   : > { %vm332_vm1 = vcmp.ne.s32.totalorder %v264_v7, 0 }
  0x80   : > { %v1857_v15 = vsel %vm332_vm1, 1.0, %v1446_v14 }
  0x81   : > { %548 = vmatmul.f32.gmra.mxu2 %v1697_v2 }
  0x82   : > { %711 = vmatmul.f32.gmra.mxu3 %v627_v47 }
  0x83   : > { %793 = vmatmul.f32.gmra.mxu1 %v627_v47  ;;  %749 = vmatmul.f32.gmra.mxu0 %v626_v46 }
  0x89   : > { %551 = vmatmul.f32.gmra.mxu2 %v1749_v18 }
  0x8a   : > { %714 = vmatmul.f32.gmra.mxu3 %v628_v48 }
  0x8b   : > { %796 = vmatmul.f32.gmra.mxu1 %v628_v48  ;;  %752 = vmatmul.f32.gmra.mxu0 %v627_v47 }
  0x93   : > { %755 = vmatmul.f32.gmra.mxu0 %v628_v48 }
  0xa9   : > { %v449_v33 = vpop.f32.mrf.mxu0 }
  0xaa   : > { %v490_v49 = vpop.f32.mrf.mxu1  ;;  %v555_v54 = vrot.slane %v449_v33, 7 }
  0xaf   : > { %v461_v52 = vpop.f32.mrf.mxu2 }
  0xb0   : > { %v502_v53 = vpop.f32.mrf.mxu3  ;;  %v559_v60 = vrot.slane %v461_v52, 7 }
  0xb2   : > { %v452_v55 = vpop.f32.mrf.mxu0 }
  0xb3   : > { %v556_v56 = vrot.slane %v452_v55, 7  ;;  %v493_v57 = vpop.f32.mrf.mxu1 }
  0xb5   : > { %v570_v58 = vsel %vm563_vm0, %v555_v54, %v556_v56 }
  0xb6   : > { %v1845_v59 = vadd.f32 %v570_v58, %v493_v57 }
  0xb9   : > { %v464_v61 = vpop.f32.mrf.mxu2 }
  0xba   : > { %v560_v63 = vrot.slane %v464_v61, 7  ;;  %v505_v0 = vpop.f32.mrf.mxu3  ;;  %v455_v1 = vpop.f32.mrf.mxu0 }
  0xbb   : > { %v557_v2 = vrot.slane %v455_v1, 7 }
  0xbc   : > { %v566_v3 = vsel %vm563_vm0, %v559_v60, %v560_v63  ;;  %v496_v4 = vpop.f32.mrf.mxu1 }
  0xbd   : > { %v1850_v5 = vadd.f32 %v566_v3, %v505_v0  ;;  %v569_v6 = vsel %vm563_vm0, %v556_v56, %v557_v2  ;;  %v227_v0 = vadd.s32 24, %v1840_v50 }
  0xbe   : > { %v1854_v8 = vadd.f32 %v569_v6, %v496_v4 }
  0xc2   : > { %v467_v9 = vpop.f32.mrf.mxu2 }
  0xc3   : > { %v561_v10 = vrot.slane %v467_v9, 7  ;;  %v508_v11 = vpop.f32.mrf.mxu3  ;;  %v458_v12 = vpop.f32.mrf.mxu0 }
  0xc4   : > { %v558_v13 = vrot.slane %v458_v12, 7  ;;  %v257_v12 = vand.u32 31, %v227_v0 }
  0xc5   : > { %v565_v16 = vsel %vm563_vm0, %v560_v63, %v561_v10  ;;  %v499_v20 = vpop.f32.mrf.mxu1 }
  0xc6   : > { %v1862_v18 = vadd.f32 %v565_v16, %v508_v11  ;;  %v567_v19 = vsel %vm563_vm0, %v558_v13, %v559_v60  ;;  %v568_v21 = vsel %vm563_vm0, %v557_v2, %v558_v13  ;;  %vm355_vm4 = vcmp.ne.s32.totalorder %v257_v12, 31 }
  0xc7   : > { %v1868_v22 = vadd.f32 %v568_v21, %v499_v20  ;;  %v576_v23 = vmul.f32 %v1857_v15, %v567_v19 }
  0xc9   : > { %v1871_v24 = vadd.f32 %v576_v23, %v502_v53 }
  0xcb   : > { %v470_v25 = vpop.f32.mrf.mxu2 }
  0xcc   : > { %v562_v27 = vrot.slane %v470_v25, 7  ;;  %v511_v28 = vpop.f32.mrf.mxu3 }
  0xce   : > { %v571_v29 = vsel %vm563_vm0, %v562_v27, %v555_v54  ;;  %v564_v30 = vsel %vm563_vm0, %v561_v10, %v562_v27 }
  0xcf   : > { %v572_v31 = vmul.f32 %v1874_v26, %v571_v29  ;;  %v1881_v34 = vadd.f32 %v564_v30, %v511_v28 }
  0xd0   : > { %v1883_v35 = vpop.f32.mrf.mxu1 }
  0xd1   : > { %v580_v36 = vadd.f32 %v572_v31, %v490_v49  ;;  %v832_v39 = vrot.slane %v1883_v35, 1 }
  0xd4   : > { %v1885_v37 = vpop.f32.mrf.mxu2 }
  0xd5   : > { %v1887_v38 = vpop.f32.mrf.mxu3  ;;  %v588_v42 = vrot.slane %v1885_v37, 1 }
  0xd6   : > { %v800_v47 = vrot.slane %v1887_v38, 7 }
  0xd8   : > { %v779_v40 = vpop.f32.mrf.mxu1  ;;  %v1891_v41 = vpop.f32.mrf.mxu0 }
  0xd9   : > { %v833_v32 = vrot.slane %v779_v40, 1 }
  0xdb   : > { %v1898_v43 = vsel %vm596_vm3, %v832_v39, %v833_v32 }
  0xdc   : > { %v534_v44 = vpop.f32.mrf.mxu2 }
  0xdd   : > { %v589_v45 = vrot.slane %v534_v44, 1  ;;  %v697_v46 = vpop.f32.mrf.mxu3 }
  0xde   : > { %v801_v48 = vrot.slane %v697_v46, 7 }
  0xdf   : > { %v603_v33 = vsel %vm596_vm3, %v588_v42, %v589_v45 }
  0xe0   : > { %v1905_v49 = vadd.f32 %v603_v33, %v580_v36  ;;  %v782_v51 = vpop.f32.mrf.mxu1  ;;  %v738_v52 = vpop.f32.mrf.mxu0  ;;  %v814_v53 = vsel %vm563_vm0, %v800_v47, %v801_v48  ;;  %v1361_v36 = vsel %vm355_vm4, 1.0, %v1446_v14 }
  0xe1   : > { %v834_v54 = vrot.slane %v782_v51, 1  ;;  %v825_v55 = vadd.f32 %v814_v53, %v738_v52 }
  0xe3   : > { %v845_v56 = vsel %vm596_vm3, %v833_v32, %v834_v54 }
  0xe4   : > { %v1913_v57 = vadd.f32 %v845_v56, %v825_v55  ;;  %v537_v58 = vpop.f32.mrf.mxu2 }
  0xe5   : > { %v590_v60 = vrot.slane %v537_v58, 1  ;;  %v700_v61 = vpop.f32.mrf.mxu3 }
  0xe6   : > { %v1916_v62 = vmul.f32 0.70710677, %v1913_v57  ;;  %v802_v63 = vrot.slane %v700_v61, 7 }
  0xe7   : > { %v602_v1 = vsel %vm596_vm3, %v589_v45, %v590_v60 }
  0xe8   : > { %v1922_v2 = vand.u32 2147483647, %v1916_v62  ;;  %v1925_v3 = vadd.f32 %v602_v1, %v1845_v59  ;;  %v785_v4 = vpop.f32.mrf.mxu1  ;;  %v741_v6 = vpop.f32.mrf.mxu0  ;;  %v813_v7 = vsel %vm563_vm0, %v801_v48, %v802_v63 }
  0xe9   : > { %v835_v9 = vrot.slane %v785_v4, 1  ;;  %v826_v10 = vadd.f32 %v813_v7, %v741_v6 }
  0xea   : > { %v889_v11 = vmul.f32 0.5, %v1922_v2 }
  0xeb   : > { %v844_v13 = vsel %vm596_vm3, %v834_v54, %v835_v9 }
  0xec   : > { %v897_v16 = vadd.f32 1.0, %v889_v11  ;;  %v1932_v17 = vadd.f32 %v844_v13, %v826_v10  ;;  %v540_v19 = vpop.f32.mrf.mxu2 }
  0xed   : > { %v591_v20 = vrot.slane %v540_v19, 1  ;;  %v703_v59 = vpop.f32.mrf.mxu3 }
  0xee   : > { %1406 = vrcp.f32 %v897_v16  ;;  %v1935_v21 = vmul.f32 0.70710677, %v1932_v17  ;;  %v803_v25 = vrot.slane %v703_v59, 7  ;;  %v930_v58 = vand.u32 2147483648, %v897_v16 }
  0xef   : > { %v601_v23 = vsel %vm596_vm3, %v590_v60, %v591_v20  ;;  %v928_v4 = vand.u32 2147483647, %v897_v16  ;;  %vm924_vm6 = vweird.f32 %v897_v16 }
  0xf0   : > { %v1940_v27 = vadd.f32 %v601_v23, %v1854_v8  ;;  %v788_v28 = vpop.f32.mrf.mxu1  ;;  %v744_v29 = vpop.f32.mrf.mxu0  ;;  %v1943_v30 = vand.u32 2147483647, %v1935_v21  ;;  %v812_v40 = vsel %vm563_vm0, %v802_v63, %v803_v25  ;;  %v931_v19 = vor.u32 1.1754944e-38, %v930_v58 }
  0xf1   : > { %v836_v31 = vrot.slane %v788_v28, 1  ;;  %v827_v46 = vadd.f32 %v812_v40, %v744_v29  ;;  %vm929_vm8 = vcmp.eq.f32.partialorder %v928_v4, 8.507059e+37 }
  0xf2   : > { %v890_v32 = vmul.f32 0.5, %v1943_v30 }
  0xf3   : > { %v843_v44 = vsel %vm596_vm3, %v835_v9, %v836_v31 }
  0xf4   : > { %v1407_v45 = vpop.eup %1406  ;;  %v851_v8 = vmul.f32 %v1361_v36, %v843_v44  ;;  %v543_v48 = vpop.f32.mrf.mxu2  ;;  %v1951_v51 = vadd.f32 1.0, %v890_v32 }
  0xf5   : > { %v920_v33 = vmul.f32 %v1407_v45, %v897_v16  ;;  %v706_v52 = vpop.f32.mrf.mxu3  ;;  %v592_v54 = vrot.slane %v543_v48, 1  ;;  %vm925_vm5 = vweird.f32 %v1407_v45 }
  0xf6   : > { %v1953_v53 = vadd.f32 %v851_v8, %v827_v46  ;;  %v804_v55 = vrot.slane %v706_v52, 7  ;;  %1408 = vrcp.f32 %v1951_v51  ;;  %vm926_vm7 = vmor %vm924_vm6, %vm925_vm5  ;;  %v943_v8 = vand.u32 2147483647, %v1951_v51 }
  0xf7   : > { %v921_v56 = vsub.f32 1.0, %v920_v33  ;;  %v600_v61 = vsel %vm596_vm3, %v591_v20, %v592_v54  ;;  %v945_v52 = vand.u32 2147483648, %v1951_v51  ;;  %vm939_vm10 = vweird.f32 %v1951_v51 }
  0xf8   : > { %v1957_v60 = vmul.f32 0.70710677, %v1953_v53  ;;  %v791_v63 = vpop.f32.mrf.mxu1  ;;  %v747_v0 = vpop.f32.mrf.mxu0  ;;  %v608_v6 = vmul.f32 %v1361_v36, %v600_v61  ;;  %v811_v10 = vsel %vm563_vm0, %v803_v25, %v804_v55  ;;  %vm944_vm12 = vcmp.eq.f32.partialorder %v943_v8, 8.507059e+37 }
  0xf9   : > { %v922_v1 = vmul.f32 %v1407_v45, %v921_v56  ;;  %v837_v9 = vrot.slane %v791_v63, 1  ;;  %v820_v13 = vmul.f32 %v1857_v15, %v811_v10 }
  0xfa   : > { %v1962_v7 = vand.u32 2147483647, %v1957_v60  ;;  %v1967_v12 = vadd.f32 %v608_v6, %v1868_v22 }
  0xfb   : > { %v923_v11 = vadd.f32 %v1407_v45, %v922_v1  ;;  %v828_v29 = vadd.f32 %v820_v13, %v747_v0  ;;  %v842_v15 = vsel %vm596_vm3, %v836_v31, %v837_v9  ;;  %v1169_v0 = vsub.f32 0.0, %v1922_v2 }
  0xfc   : > { %v891_v20 = vmul.f32 0.5, %v1962_v7  ;;  %v546_v59 = vpop.f32.mrf.mxu2  ;;  %v1409_v23 = vpop.eup %1408  ;;  %v946_v13 = vor.u32 1.1754944e-38, %v945_v52 }
  0xfd   : > { %v927_v28 = vsel %vm926_vm7, %v1407_v45, %v923_v11  ;;  %v593_v36 = vrot.slane %v546_v59, 1  ;;  %v1971_v40 = vpop.f32.mrf.mxu3  ;;  %v935_v16 = vmul.f32 %v1409_v23, %v1951_v51  ;;  %v1981_v44 = vadd.f32 %v842_v15, %v828_v29 }
  0xfe   : > { %v1973_v25 = vsel %vm929_vm8, %v931_v19, %v927_v28  ;;  %v1976_v22 = vadd.f32 1.0, %v891_v20  ;;  %vm940_vm9 = vweird.f32 %v1409_v23 }
  0xff   : > { %v1025_v32 = vmul.f32 0.17087276, %v1973_v25  ;;  %v599_v45 = vsel %vm596_vm3, %v592_v54, %v593_v36  ;;  %v936_v46 = vsub.f32 1.0, %v935_v16  ;;  %v1991_v56 = vmul.f32 0.70710677, %v1981_v44  ;;  %vm941_vm11 = vmor %vm939_vm10, %vm940_vm9 }
 0x100   : > { %1410 = vrcp.f32 %v1976_v22  ;;  %v1987_v48 = vpop.f32.mrf.mxu1  ;;  %v1994_v58 = vadd.f32 %v599_v45, %v1871_v24  ;;  %v805_v54 = vrot.slane %v1971_v40, 7  ;;  %v750_v61 = vpop.f32.mrf.mxu0  ;;  %vm954_vm14 = vweird.f32 %v1976_v22 }
 0x101   : > { %v1033_v33 = vadd.f32 -0.82215226, %v1025_v32  ;;  %v937_v31 = vmul.f32 %v1409_v23, %v936_v46  ;;  %v2000_v1 = vand.u32 2147483647, %v1991_v56  ;;  %v838_v6 = vrot.slane %v1987_v48, 1 }
 0x102   : > { %v810_v10 = vsel %vm563_vm0, %v804_v55, %v805_v54  ;;  %v231_v32 = vadd.s32 56, %v1840_v50 }
 0x103   : > { %v1041_v63 = vmul.f32 %v1033_v33, %v1973_v25  ;;  %v938_v4 = vadd.f32 %v1409_v23, %v937_v31  ;;  %v892_v19 = vmul.f32 0.5, %v2000_v1  ;;  %v829_v20 = vadd.f32 %v810_v10, %v750_v61 }
 0x104   : > { %v2006_v24 = vpop.f32.mrf.mxu2  ;;  %v841_v29 = vsel %vm596_vm3, %v837_v9, %v838_v6 }
 0x105   : > { %v1049_v11 = vadd.f32 1.4885159, %v1041_v63  ;;  %v942_v28 = vsel %vm941_vm11, %v1409_v23, %v938_v4  ;;  %v594_v51 = vrot.slane %v2006_v24, 1  ;;  %v2016_v15 = vpop.f32.mrf.mxu3  ;;  %v958_v23 = vand.u32 2147483647, %v1976_v22 }
 0x106   : > { %v1411_v59 = vpop.eup %1410  ;;  %v2013_v16 = vsel %vm944_vm12, %v946_v13, %v942_v28  ;;  %v2021_v46 = vadd.f32 1.0, %v892_v19  ;;  %v2023_v8 = vadd.f32 %v841_v29, %v829_v20  ;;  %v960_v63 = vand.u32 2147483648, %v1976_v22 }
 0x107   : > { %v1057_v40 = vmul.f32 %v1049_v11, %v1973_v25  ;;  %v950_v55 = vmul.f32 %v1411_v59, %v1976_v22  ;;  %v1026_v45 = vmul.f32 0.17087276, %v2013_v16  ;;  %v598_v52 = vsel %vm596_vm3, %v593_v36, %v594_v51 }
 0x108   : > { %v797_v9 = vpop.f32.mrf.mxu1  ;;  %1412 = vrcp.f32 %v2021_v46  ;;  %v806_v4 = vrot.slane %v2016_v15, 7  ;;  %vm955_vm13 = vweird.f32 %v1411_v59  ;;  %v285_v13 = vand.u32 31, %v231_v32  ;;  %v753_v28 = vpop.f32.mrf.mxu0 }
 0x109   : > { %v1065_v48 = vadd.f32 -1.135204, %v1057_v40  ;;  %v951_v33 = vsub.f32 1.0, %v950_v55  ;;  %v839_v31 = vrot.slane %v797_v9, 1  ;;  %v1034_v61 = vadd.f32 -0.82215226, %v1026_v45  ;;  %vm956_vm1 = vmor %vm954_vm14, %vm955_vm13 }
 0x10a   : > { %v2036_v20 = vmul.f32 0.70710677, %v2023_v8  ;;  %v2039_v36 = vadd.f32 %v598_v52, %v1850_v5  ;;  %vm959_vm15 = vcmp.eq.f32.partialorder %v958_v23, 8.507059e+37  ;;  %v961_v45 = vor.u32 1.1754944e-38, %v960_v63 }
 0x10b   : > { %v1073_v10 = vmul.f32 %v1065_v48, %v1973_v25  ;;  %v952_v11 = vmul.f32 %v1411_v59, %v951_v33  ;;  %v1042_v19 = vmul.f32 %v1034_v61, %v2013_v16  ;;  %v2045_v55 = vsel %vm596_vm3, %v839_v31, %v832_v39 }
 0x10c   : > { %v2048_v22 = vand.u32 2147483647, %v2036_v20  ;;  %v809_v5 = vsel %vm563_vm0, %v805_v54, %v806_v4  ;;  %v840_v35 = vsel %vm596_vm3, %v838_v6, %v839_v31  ;;  %v2058_v33 = vmul.f32 %v1169_v0, %v1922_v2  ;;  %v552_v0 = vpop.f32.mrf.mxu2 }
 0x10d   : > { %v1081_v29 = vadd.f32 0.27886808, %v1073_v10  ;;  %v953_v40 = vadd.f32 %v1411_v59, %v952_v11  ;;  %v1050_v32 = vadd.f32 1.4885159, %v1042_v19  ;;  %v830_v48 = vadd.f32 %v809_v5, %v753_v28 }
 0x10e   : > { %v1413_v39 = vpop.eup %1412  ;;  %v893_v63 = vmul.f32 0.5, %v2048_v22  ;;  %v1170_v54 = vsub.f32 0.0, %v1943_v30  ;;  %vm2071_vm2 = vcmp.ne.s32.totalorder %v285_v13, 31  ;;  %v975_v5 = vand.u32 2147483648, %v2021_v46 }
 0x10f   : > { %v1089_v9 = vmul.f32 %v1081_v29, %v1973_v25  ;;  %v957_v23 = vsel %vm956_vm1, %v1411_v59, %v953_v40  ;;  %v1058_v52 = vmul.f32 %v1050_v32, %v2013_v16  ;;  %v965_v59 = vmul.f32 %v1413_v39, %v2021_v46 }
 0x110   : > { %v2061_v61 = vsel %vm959_vm15, %v961_v45, %v957_v23  ;;  %v2067_v28 = vadd.f32 1.0, %v893_v63  ;;  %v2069_v6 = vadd.f32 %v840_v35, %v830_v48  ;;  %v973_v32 = vand.u32 2147483647, %v2021_v46 }
 0x111   : > { %v1097_v10 = vadd.f32 -0.18628806, %v1089_v9  ;;  %v1027_v11 = vmul.f32 0.17087276, %v2061_v61  ;;  %v1066_v19 = vadd.f32 -1.135204, %v1058_v52  ;;  %vm970_vm4 = vweird.f32 %v1413_v39 }
 0x112   : > { %v966_v40 = vsub.f32 1.0, %v965_v59  ;;  %1414 = vrcp.f32 %v2067_v28  ;;  %v595_v48 = vrot.slane %v552_v0, 1  ;;  %v2082_v52 = vmul.f32 %v1170_v54, %v1943_v30 }
 0x113   : > { %v1105_v31 = vmul.f32 %v1097_v10, %v1973_v25  ;;  %v1035_v29 = vadd.f32 -0.82215226, %v1027_v11  ;;  %v1074_v45 = vmul.f32 %v1066_v19, %v2013_v16  ;;  %v2085_v63 = vmul.f32 0.70710677, %v2069_v6 }
 0x114   : > { %v967_v23 = vmul.f32 %v1413_v39, %v966_v40  ;;  %v2090_v10 = vsel %vm2071_vm2, 1.0, %v1446_v14  ;;  %vm969_vm5 = vweird.f32 %v2021_v46  ;;  %vm974_vm7 = vcmp.eq.f32.partialorder %v973_v32, 8.507059e+37 }
 0x115   : > { %v1113_v9 = vadd.f32 0.09678418, %v1105_v31  ;;  %v1043_v13 = vmul.f32 %v1035_v29, %v2061_v61  ;;  %v1082_v35 = vadd.f32 0.27886808, %v1074_v45  ;;  %vm971_vm6 = vmor %vm969_vm5, %vm970_vm4  ;;  %v976_v30 = vor.u32 1.1754944e-38, %v975_v5 }
 0x116   : > { %v968_v19 = vadd.f32 %v1413_v39, %v967_v23  ;;  %v2097_v54 = vand.u32 2147483647, %v2085_v63  ;;  %v604_v29 = vsel %vm596_vm3, %v595_v48, %v588_v42  ;;  %v990_v42 = vand.u32 2147483648, %v2067_v28 }
 0x117   : > { %v1121_v11 = vmul.f32 %v1113_v9, %v1973_v25  ;;  %v1051_v59 = vadd.f32 1.4885159, %v1043_v13  ;;  %v1090_v0 = vmul.f32 %v1082_v35, %v2013_v16  ;;  %v988_v35 = vand.u32 2147483647, %v2067_v28 }
 0x118   : > { %v972_v14 = vsel %vm971_vm6, %v1413_v39, %v968_v19  ;;  %v1415_v40 = vpop.eup %1414  ;;  %v894_v32 = vmul.f32 0.5, %v2097_v54  ;;  %vm984_vm9 = vweird.f32 %v2067_v28  ;;  %vm1225_vm13 = vcmp.ge.f32.partialorder %v1916_v62, 0.0 }
 0x119   : > { %v1129_v31 = vadd.f32 0.37409195, %v1121_v11  ;;  %v1059_v2 = vmul.f32 %v1051_v59, %v2061_v61  ;;  %v1098_v46 = vadd.f32 -0.18628806, %v1090_v0  ;;  %v2105_v9 = vsel %vm974_vm7, %v976_v30, %v972_v14 }
 0x11a   : > { %v1028_v23 = vmul.f32 0.17087276, %v2105_v9  ;;  %v980_v39 = vmul.f32 %v1415_v40, %v2067_v28  ;;  %v2114_v11 = vadd.f32 1.0, %v894_v32  ;;  %vm985_vm8 = vweird.f32 %v1415_v40 }
 0x11b   : > { %v1137_v5 = vmul.f32 %v1129_v31, %v1973_v25  ;;  %v1067_v13 = vadd.f32 -1.135204, %v1059_v2  ;;  %v1106_v37 = vmul.f32 %v1098_v46, %v2013_v16  ;;  %v597_v31 = vsel %vm596_vm3, %v594_v51, %v595_v48  ;;  %vm986_vm3 = vmor %vm984_vm9, %vm985_vm8 }
 0x11c   : > { %v1036_v0 = vadd.f32 -0.82215226, %v1028_v23  ;;  %v981_v30 = vsub.f32 1.0, %v980_v39  ;;  %1416 = vrcp.f32 %v2114_v11  ;;  %vm2126_vm10 = vcmp.eq.f32.partialorder %v988_v35, 8.507059e+37 }
 0x11d   : > { %v1145_v59 = vadd.f32 1.0000237, %v1137_v5  ;;  %v1075_v19 = vmul.f32 %v1067_v13, %v2061_v61  ;;  %v1114_v14 = vadd.f32 0.09678418, %v1106_v37  ;;  %v612_v23 = vmul.f32 %v2090_v10, %v604_v29  ;;  %v715_v37 = vpop.f32.mrf.mxu3 }
 0x11e   : > { %v1044_v32 = vmul.f32 %v1036_v0, %v2105_v9  ;;  %v982_v45 = vmul.f32 %v1415_v40, %v981_v30  ;;  %v2134_v0 = vadd.f32 %v597_v31, %v1862_v18  ;;  %vm999_vm11 = vweird.f32 %v2114_v11 }
 0x11f   : > { %v1153_v2 = vmul.f32 %v1145_v59, %v1973_v25  ;;  %v1083_v46 = vadd.f32 0.27886808, %v1075_v19  ;;  %v1122_v5 = vmul.f32 %v1114_v14, %v2013_v16  ;;  %v991_v19 = vor.u32 1.1754944e-38, %v990_v42 }
 0x120   : > { %v1052_v51 = vadd.f32 1.4885159, %v1044_v32  ;;  %v983_v48 = vadd.f32 %v1415_v40, %v982_v45  ;;  %v2137_v28 = vadd.f32 %v612_v23, %v1881_v34  ;;  %v1003_v18 = vand.u32 2147483647, %v2114_v11 }
 0x121   : > { %v1161_v24 = vadd.f32 -1.2655122, %v1153_v2  ;;  %v1091_v39 = vmul.f32 %v1083_v46, %v2061_v61  ;;  %v1130_v59 = vadd.f32 0.37409195, %v1122_v5  ;;  %v807_v42 = vrot.slane %v715_v37, 7 }
 0x122   : > { %v1060_v29 = vmul.f32 %v1052_v51, %v2105_v9  ;;  %v987_v14 = vsel %vm986_vm3, %v1415_v40, %v983_v48  ;;  %v1417_v2 = vpop.eup %1416  ;;  %v1005_v23 = vand.u32 2147483648, %v2114_v11  ;;  %v855_v50 = vmul.f32 %v2090_v10, %v2045_v55 }
 0x123   : > { %v1185_v35 = vadd.f32 %v2058_v33, %v1161_v24  ;;  %v1099_v30 = vadd.f32 -0.18628806, %v1091_v39  ;;  %v1138_v45 = vmul.f32 %v1130_v59, %v2013_v16  ;;  %v2144_v46 = vsel %vm2126_vm10, %v991_v19, %v987_v14  ;;  %v756_v24 = vpop.f32.mrf.mxu0 }
 0x124   : > { %v1068_v33 = vadd.f32 -1.135204, %v1060_v29  ;;  %v1029_v32 = vmul.f32 0.17087276, %v2144_v46  ;;  %v995_v40 = vmul.f32 %v1417_v2, %v2114_v11  ;;  %v815_v13 = vsel %vm563_vm0, %v807_v42, %v800_v47 }
 0x125   : > { %v1194_v34 = vmul.f32 1.442695, %v1185_v35  ;;  %v1107_v31 = vmul.f32 %v1099_v30, %v2061_v61  ;;  %v1146_v5 = vadd.f32 1.0000237, %v1138_v45  ;;  %v816_v19 = vmul.f32 %v1874_v26, %v815_v13 }
 0x126   : > { %v1076_v51 = vmul.f32 %v1068_v33, %v2105_v9  ;;  %v1037_v48 = vadd.f32 -0.82215226, %v1029_v32  ;;  %v996_v59 = vsub.f32 1.0, %v995_v40  ;;  %v808_v35 = vsel %vm563_vm0, %v806_v4, %v807_v42 }
 0x127   : > { %1418 = vpow2.f32 %v1194_v34  ;;  %v1115_v39 = vadd.f32 0.09678418, %v1107_v31  ;;  %v1154_v37 = vmul.f32 %v1146_v5, %v2013_v16  ;;  %v831_v29 = vadd.f32 %v808_v35, %v756_v24 }
 0x128   : > { %v1084_v30 = vadd.f32 0.27886808, %v1076_v51  ;;  %v1045_v47 = vmul.f32 %v1037_v48, %v2144_v46  ;;  %v997_v45 = vmul.f32 %v1417_v2, %v996_v59  ;;  %vm1000_vm12 = vweird.f32 %v1417_v2 }
 0x129   : > { %v1123_v38 = vmul.f32 %v1115_v39, %v2061_v61  ;;  %v1162_v14 = vadd.f32 -1.2655122, %v1154_v37  ;;  %v824_v34 = vadd.f32 %v816_v19, %v1891_v41  ;;  %v1006_v33 = vor.u32 1.1754944e-38, %v1005_v23  ;;  %vm1001_vm0 = vmor %vm999_vm11, %vm1000_vm12 }
 0x12a   : > { %v1092_v26 = vmul.f32 %v1084_v30, %v2105_v9  ;;  %v1053_v15 = vadd.f32 1.4885159, %v1045_v47  ;;  %v998_v42 = vadd.f32 %v1417_v2, %v997_v45  ;;  %v2179_v24 = vadd.f32 %v855_v50, %v831_v29 }
 0x12b   : > { %v1131_v31 = vadd.f32 0.37409195, %v1123_v38  ;;  %v1186_v4 = vadd.f32 %v2082_v52, %v1162_v14  ;;  %v2172_v32 = vadd.f32 %v1898_v43, %v824_v34  ;;  %vm1004_vm14 = vcmp.eq.f32.partialorder %v1003_v18, 8.507059e+37 }
 0x12c   : > { %v1100_v41 = vadd.f32 -0.18628806, %v1092_v26  ;;  %v1061_v13 = vmul.f32 %v1053_v15, %v2144_v46  ;;  %v1002_v10 = vsel %vm1001_vm0, %v1417_v2, %v998_v42  ;;  %v2192_v2 = vmul.f32 0.70710677, %v2179_v24 }
 0x12d   : > { %v1419_v5 = vpop.eup %1418  ;;  %v1139_v40 = vmul.f32 %v1131_v31, %v2061_v61  ;;  %v1196_v52 = vmul.f32 1.442695, %v1186_v4  ;;  %v2183_v51 = vsel %vm1004_vm14, %v1006_v33, %v1002_v10  ;;  %v2187_v11 = vmul.f32 0.70710677, %v2172_v32 }
 0x12e   : > { %v1209_v55 = vmul.f32 %v1419_v5, %v1973_v25  ;;  %v1108_v43 = vmul.f32 %v1100_v41, %v2105_v9  ;;  %v1069_v39 = vadd.f32 -1.135204, %v1061_v13  ;;  %v1030_v37 = vmul.f32 0.17087276, %v2183_v51 }
 0x12f   : > { %v1147_v23 = vadd.f32 1.0000237, %v1139_v40  ;;  %1420 = vpow2.f32 %v1196_v52  ;;  %v2328_v35 = vsub.f32 0.0, %v1962_v7  ;;  %v2198_v47 = vand.u32 2147483647, %v2187_v11 }
 0x130   : > { %v1217_v48 = vsub.f32 1.0, %v1209_v55  ;;  %v1116_v19 = vadd.f32 0.09678418, %v1108_v43  ;;  %v1077_v25 = vmul.f32 %v1069_v39, %v2144_v46  ;;  %v1038_v30 = vadd.f32 -0.82215226, %v1030_v37 }
 0x131   : > { %v1155_v59 = vmul.f32 %v1147_v23, %v2061_v61  ;;  %v1179_v38 = vmul.f32 %v2328_v35, %v1962_v7  ;;  %v2202_v34 = vand.u32 2147483647, %v2192_v2  ;;  %v865_v31 = vmul.f32 0.5, %v1913_v57 }
 0x132   : > { %v1233_v18 = vsub.f32 0.0, %v1217_v48  ;;  %v1124_v14 = vmul.f32 %v1116_v19, %v2105_v9  ;;  %v1085_v45 = vadd.f32 0.27886808, %v1077_v25  ;;  %v1046_v15 = vmul.f32 %v1038_v30, %v2183_v51 }
 0x133   : > { %v1163_v29 = vadd.f32 -1.2655122, %v1155_v59  ;;  %v888_v7 = vmul.f32 0.5, %v2198_v47  ;;  %v895_v13 = vmul.f32 0.5, %v2202_v34  ;;  %v1172_v10 = vsub.f32 0.0, %v2000_v1 }
 0x134   : > { %v1241_v26 = vsel %vm1225_vm13, %v1217_v48, %v1233_v18  ;;  %v1132_v42 = vadd.f32 0.37409195, %v1124_v14  ;;  %v1093_v33 = vmul.f32 %v1085_v45, %v2144_v46  ;;  %v1054_v40 = vadd.f32 1.4885159, %v1046_v15 }
 0x135   : > { %v1249_v50 = vadd.f32 1.0, %v1241_v26  ;;  %v1187_v4 = vadd.f32 %v1179_v38, %v1163_v29  ;;  %v1421_v5 = vpop.eup %1420  ;;  %v2210_v41 = vadd.f32 1.0, %v888_v7  ;;  %v1173_v18 = vsub.f32 0.0, %v2048_v22 }
 0x136   : > { %v1210_v62 = vmul.f32 %v1421_v5, %v2013_v16  ;;  %v1140_v52 = vmul.f32 %v1132_v42, %v2105_v9  ;;  %v1101_v23 = vadd.f32 -0.18628806, %v1093_v33  ;;  %v1062_v43 = vmul.f32 %v1054_v40, %v2183_v51 }
 0x137   : > { %v1257_v57 = vmul.f32 %v1249_v50, %v865_v31  ;;  %v1198_v55 = vmul.f32 1.442695, %v1187_v4  ;;  %1422 = vrcp.f32 %v2210_v41  ;;  %v2229_v35 = vadd.f32 1.0, %v895_v13 }
 0x138   : > { %v1218_v48 = vsub.f32 1.0, %v1210_v62  ;;  %v1148_v16 = vadd.f32 1.0000237, %v1140_v52  ;;  %v1109_v37 = vmul.f32 %v1101_v23, %v2144_v46  ;;  %v1070_v59 = vadd.f32 -1.135204, %v1062_v43 }
 0x139   : > { %v1265_v39 = vmul.f32 %v1257_v57, %v1925_v3  ;;  %1424 = vpow2.f32 %v1198_v55  ;;  %v866_v38 = vmul.f32 0.5, %v1932_v17  ;;  %vm1226_vm15 = vcmp.ge.f32.partialorder %v1935_v21, 0.0 }
 0x13a   : > { %v1234_v19 = vsub.f32 0.0, %v1218_v48  ;;  %v1156_v25 = vmul.f32 %v1148_v16, %v2105_v9  ;;  %v1117_v30 = vadd.f32 0.09678418, %v1109_v37  ;;  %v1078_v3 = vmul.f32 %v1070_v59, %v2183_v51 }
 0x13b   : > { %1273 = vst [vmem:[%s2219_s30 + $0x8] sm:$0xff] %v1265_v39  ;;  %v1180_v45 = vmul.f32 %v1172_v10, %v2000_v1  ;;  %1426 = vrcp.f32 %v2229_v35  ;;  %v867_v15 = vmul.f32 0.5, %v1953_v53  ;;  %vm1227_vm1 = vcmp.ge.f32.partialorder %v1957_v60, 0.0 }
 0x13c   : > { %v1242_v29 = vsel %vm1226_vm15, %v1218_v48, %v1234_v19  ;;  %v1164_v14 = vadd.f32 -1.2655122, %v1156_v25  ;;  %v1125_v7 = vmul.f32 %v1117_v30, %v2144_v46  ;;  %v1086_v50 = vadd.f32 0.27886808, %v1078_v3 }
 0x13d   : > { %v1423_v31 = vpop.eup %1422  ;;  %v1250_v26 = vadd.f32 1.0, %v1242_v29  ;;  %v1181_v21 = vmul.f32 %v1173_v18, %v2048_v22  ;;  %v913_v57 = vand.u32 2147483647, %v2210_v41  ;;  %v915_v62 = vand.u32 2147483648, %v2210_v41 }
 0x13e   : > { %v1188_v17 = vadd.f32 %v1180_v45, %v1164_v14  ;;  %v905_v42 = vmul.f32 %v1423_v31, %v2210_v41  ;;  %v1133_v5 = vadd.f32 0.37409195, %v1125_v7  ;;  %v1094_v40 = vmul.f32 %v1086_v50, %v2183_v51 }
 0x13f   : > { %v1425_v4 = vpop.eup %1424  ;;  %v1258_v33 = vmul.f32 %v1250_v26, %v866_v38  ;;  %vm909_vm2 = vweird.f32 %v2210_v41  ;;  %vm910_vm4 = vweird.f32 %v1423_v31  ;;  %vm914_vm5 = vcmp.eq.f32.partialorder %v913_v57, 8.507059e+37 }
 0x140   : > { %v1211_v1 = vmul.f32 %v1425_v4, %v2061_v61  ;;  %v1200_v13 = vmul.f32 1.442695, %v1188_v17  ;;  %v906_v53 = vsub.f32 1.0, %v905_v42  ;;  %v1141_v22 = vmul.f32 %v1133_v5, %v2144_v46  ;;  %vm911_vm6 = vmor %vm909_vm2, %vm910_vm4 }
 0x141   : > { %v1266_v55 = vmul.f32 %v1258_v33, %v1940_v27  ;;  %v1102_v10 = vadd.f32 -0.18628806, %v1094_v40  ;;  %v1427_v23 = vpop.eup %1426  ;;  %v916_v27 = vor.u32 1.1754944e-38, %v915_v62  ;;  %v1018_v59 = vand.u32 2147483647, %v2229_v35 }
 0x142   : > { %v1219_v52 = vsub.f32 1.0, %v1211_v1  ;;  %1428 = vpow2.f32 %v1200_v13  ;;  %v907_v43 = vmul.f32 %v1423_v31, %v906_v53  ;;  %v1149_v39 = vadd.f32 1.0000237, %v1141_v22 }
 0x143   : > { %1274 = vst [vmem:[%s2219_s30 + $0x10] sm:$0xff] %v1266_v55  ;;  %v1110_v48 = vmul.f32 %v1102_v10, %v2183_v51  ;;  %v1010_v16 = vmul.f32 %v1427_v23, %v2229_v35  ;;  %vm1015_vm7 = vweird.f32 %v1427_v23  ;;  %v1020_v3 = vand.u32 2147483648, %v2229_v35 }
 0x144   : > { %v1235_v61 = vsub.f32 0.0, %v1219_v52  ;;  %v908_v37 = vadd.f32 %v1423_v31, %v907_v43  ;;  %v1157_v25 = vmul.f32 %v1149_v39, %v2144_v46  ;;  %vm1014_vm8 = vweird.f32 %v2229_v35 }
 0x145   : > { %v1118_v18 = vadd.f32 0.09678418, %v1110_v48  ;;  %v1011_v41 = vsub.f32 1.0, %v1010_v16  ;;  %vm1016_vm9 = vmor %vm1014_vm8, %vm1015_vm7  ;;  %vm1019_vm10 = vcmp.eq.f32.partialorder %v1018_v59, 8.507059e+37  ;;  %v1021_v5 = vor.u32 1.1754944e-38, %v1020_v3 }
 0x146   : > { %v1243_v19 = vsel %vm1227_vm1, %v1219_v52, %v1235_v61  ;;  %v912_v30 = vsel %vm911_vm6, %v1423_v31, %v908_v37  ;;  %v1165_v29 = vadd.f32 -1.2655122, %v1157_v25  ;;  %v1174_v35 = vsub.f32 0.0, %v2097_v54 }
 0x147   : > { %v1251_v38 = vadd.f32 1.0, %v1243_v19  ;;  %v1126_v14 = vmul.f32 %v1118_v18, %v2183_v51  ;;  %v2257_v45 = vsel %vm914_vm5, %v916_v27, %v912_v30  ;;  %v1012_v26 = vmul.f32 %v1427_v23, %v1011_v41 }
 0x148   : > { %v1429_v7 = vpop.eup %1428  ;;  %v1024_v60 = vmul.f32 0.17087276, %v2257_v45  ;;  %v1189_v17 = vadd.f32 %v1181_v21, %v1165_v29  ;;  %vm1228_vm3 = vcmp.ge.f32.partialorder %v1991_v56, 0.0  ;;  %v1182_v48 = vmul.f32 %v1174_v35, %v2097_v54 }
 0x149   : > { %v1259_v50 = vmul.f32 %v1251_v38, %v867_v15  ;;  %v1212_v4 = vmul.f32 %v1429_v7, %v2105_v9  ;;  %v1134_v31 = vadd.f32 0.37409195, %v1126_v14  ;;  %v1013_v42 = vadd.f32 %v1427_v23, %v1012_v26 }
 0x14a   : > { %v1032_v1 = vadd.f32 -0.82215226, %v1024_v60  ;;  %v1202_v13 = vmul.f32 1.442695, %v1189_v17  ;;  %vm1229_vm11 = vcmp.ge.f32.partialorder %v2036_v20, 0.0  ;;  %v869_v7 = vmul.f32 0.5, %v2023_v8 }
 0x14b   : > { %v1267_v33 = vmul.f32 %v1259_v50, %v1967_v12  ;;  %v1220_v40 = vsub.f32 1.0, %v1212_v4  ;;  %v1142_v15 = vmul.f32 %v1134_v31, %v2183_v51  ;;  %v1017_v53 = vsel %vm1016_vm9, %v1427_v23, %v1013_v42 }
 0x14c   : > { %v1040_v9 = vmul.f32 %v1032_v1, %v2257_v45  ;;  %v2268_v21 = vsel %vm1019_vm10, %v1021_v5, %v1017_v53  ;;  %1430 = vpow2.f32 %v1202_v13  ;;  %v868_v23 = vmul.f32 0.5, %v1981_v44 }
 0x14d   : > { %1275 = vst [vmem:[%s2219_s30 + $0x18] sm:$0xff] %v1267_v33  ;;  %v1236_v57 = vsub.f32 0.0, %v1220_v40  ;;  %v1150_v12 = vadd.f32 1.0000237, %v1142_v15  ;;  %v1031_v62 = vmul.f32 0.17087276, %v2268_v21 }
 0x14e   : > { %v1048_v55 = vadd.f32 1.4885159, %v1040_v9  ;;  %vm1230_vm12 = vcmp.ge.f32.partialorder %v2085_v63, 0.0  ;;  %vm1224_vm13 = vcmp.ge.f32.partialorder %v2187_v11, 0.0  ;;  %vm1231_vm0 = vcmp.ge.f32.partialorder %v2192_v2, 0.0 }
 0x14f   : > { %v1244_v52 = vsel %vm1228_vm3, %v1220_v40, %v1236_v57  ;;  %v1158_v22 = vmul.f32 %v1150_v12, %v2183_v51  ;;  %v1039_v10 = vadd.f32 -0.82215226, %v1031_v62 }
 0x150   : > { %v1252_v43 = vadd.f32 1.0, %v1244_v52  ;;  %v1056_v61 = vmul.f32 %v1048_v55, %v2257_v45  ;;  %v1168_v55 = vsub.f32 0.0, %v2198_v47 }
 0x151   : > { %v1166_v39 = vadd.f32 -1.2655122, %v1158_v22  ;;  %v1047_v16 = vmul.f32 %v1039_v10, %v2268_v21 }
 0x152   : > { %v1260_v37 = vmul.f32 %v1252_v43, %v868_v23  ;;  %v1064_v27 = vadd.f32 -1.135204, %v1056_v61  ;;  %v1431_v59 = vpop.eup %1430  ;;  %v1176_v61 = vmul.f32 %v1168_v55, %v2198_v47 }
 0x153   : > { %v1190_v56 = vadd.f32 %v1182_v48, %v1166_v39  ;;  %v1055_v19 = vadd.f32 1.4885159, %v1047_v16  ;;  %v1213_v18 = vmul.f32 %v1431_v59, %v2144_v46 }
 0x154   : > { %v1268_v25 = vmul.f32 %v1260_v37, %v1994_v58  ;;  %v1072_v44 = vmul.f32 %v1064_v27, %v2257_v45 }
 0x155   : > { %v1204_v41 = vmul.f32 1.442695, %v1190_v56  ;;  %v1063_v38 = vmul.f32 %v1055_v19, %v2268_v21  ;;  %v1221_v30 = vsub.f32 1.0, %v1213_v18 }
 0x156   : > { %1276 = vst [vmem:[%s2219_s30 + $0x20] sm:$0xff] %v1268_v25  ;;  %v1080_v3 = vadd.f32 0.27886808, %v1072_v44 }
 0x157   : > { %1432 = vpow2.f32 %v1204_v41  ;;  %v1071_v54 = vadd.f32 -1.135204, %v1063_v38  ;;  %v1237_v29 = vsub.f32 0.0, %v1221_v30 }
 0x158   : > { %v1088_v14 = vmul.f32 %v1080_v3, %v2257_v45 }
 0x159   : > { %v1079_v26 = vmul.f32 %v1071_v54, %v2268_v21  ;;  %v1245_v58 = vsel %vm1229_vm11, %v1221_v30, %v1237_v29  ;;  %v864_v30 = vmul.f32 0.5, %v2172_v32 }
 0x15a   : > { %v1096_v46 = vadd.f32 -0.18628806, %v1088_v14  ;;  %v1253_v50 = vadd.f32 1.0, %v1245_v58 }
 0x15b   : > { %v1087_v60 = vadd.f32 0.27886808, %v1079_v26  ;;  %v871_v26 = vmul.f32 0.5, %v2179_v24 }
 0x15c   : > { %v1104_v4 = vmul.f32 %v1096_v46, %v2257_v45  ;;  %v1261_v31 = vmul.f32 %v1253_v50, %v869_v7 }
 0x15d   : > { %v1433_v17 = vpop.eup %1432  ;;  %v1095_v42 = vmul.f32 %v1087_v60, %v2268_v21 }
 0x15e   : > { %v1214_v33 = vmul.f32 %v1433_v17, %v2183_v51  ;;  %v1112_v1 = vadd.f32 0.09678418, %v1104_v4  ;;  %v1269_v20 = vmul.f32 %v1261_v31, %v2039_v36  ;;  %v870_v51 = vmul.f32 0.5, %v2069_v6 }
 0x15f   : > { %v1103_v5 = vadd.f32 -0.18628806, %v1095_v42  ;;  %v1175_v6 = vsub.f32 0.0, %v2202_v34 }
 0x160   : > { %v1222_v40 = vsub.f32 1.0, %v1214_v33  ;;  %v1120_v13 = vmul.f32 %v1112_v1, %v2257_v45  ;;  %1277 = vst [vmem:[%s2219_s30 + $0x28] sm:$0xff] %v1269_v20 }
 0x161   : > { %v1111_v8 = vmul.f32 %v1103_v5, %v2268_v21  ;;  %v1183_v59 = vmul.f32 %v1175_v6, %v2202_v34 }
 0x162   : > { %v1238_v15 = vsub.f32 0.0, %v1222_v40  ;;  %v1128_v53 = vadd.f32 0.37409195, %v1120_v13 }
 0x163   : > { %v1119_v35 = vadd.f32 0.09678418, %v1111_v8 }
 0x164   : > { %v1246_v9 = vsel %vm1230_vm12, %v1222_v40, %v1238_v15  ;;  %v1136_v57 = vmul.f32 %v1128_v53, %v2257_v45 }
 0x165   : > { %v1254_v12 = vadd.f32 1.0, %v1246_v9  ;;  %v1127_v36 = vmul.f32 %v1119_v35, %v2268_v21 }
 0x166   : > { %v1144_v62 = vadd.f32 1.0000237, %v1136_v57 }
 0x167   : > { %v1262_v52 = vmul.f32 %v1254_v12, %v870_v51  ;;  %v1135_v22 = vadd.f32 0.37409195, %v1127_v36 }
 0x168   : > { %v1152_v10 = vmul.f32 %v1144_v62, %v2257_v45 }
 0x169   : > { %v1270_v23 = vmul.f32 %v1262_v52, %v2134_v0  ;;  %v1143_v63 = vmul.f32 %v1135_v22, %v2268_v21 }
 0x16a   : > { %v1160_v43 = vadd.f32 -1.2655122, %v1152_v10 }
 0x16b   : > { %1278 = vst [vmem:[%s2219_s30 + $0x30] sm:$0xff] %v1270_v23  ;;  %v1151_v39 = vadd.f32 1.0000237, %v1143_v63 }
 0x16c   : > { %v1184_v48 = vadd.f32 %v1176_v61, %v1160_v43 }
 0x16d   : > { %v1159_v16 = vmul.f32 %v1151_v39, %v2268_v21 }
 0x16e   : > { %v1192_v37 = vmul.f32 1.442695, %v1184_v48 }
 0x16f   : > { %v1167_v27 = vadd.f32 -1.2655122, %v1159_v16 }
 0x170   : > { %1434 = vpow2.f32 %v1192_v37 }
 0x171   : > { %v1191_v56 = vadd.f32 %v1183_v59, %v1167_v27 }
 0x173   : > { %v1206_v19 = vmul.f32 1.442695, %v1191_v56 }
 0x175   : > { %1436 = vpow2.f32 %v1206_v19 }
 0x176   : > { %v1435_v0 = vpop.eup %1434 }
 0x177   : > { %v1208_v25 = vmul.f32 %v1435_v0, %v2257_v45 }
 0x179   : > { %v1216_v18 = vsub.f32 1.0, %v1208_v25 }
 0x17b   : > { %v1437_v47 = vpop.eup %1436  ;;  %v1232_v44 = vsub.f32 0.0, %v1216_v18 }
 0x17c   : > { %v1215_v41 = vmul.f32 %v1437_v47, %v2268_v21 }
 0x17d   : > { %v1240_v38 = vsel %vm1224_vm13, %v1216_v18, %v1232_v44 }
 0x17e   : > { %v1248_v34 = vadd.f32 1.0, %v1240_v38  ;;  %v1223_v3 = vsub.f32 1.0, %v1215_v41 }
 0x180   : > { %v1256_v54 = vmul.f32 %v1248_v34, %v864_v30  ;;  %v1239_v29 = vsub.f32 0.0, %v1223_v3 }
 0x182   : > { %v1264_v45 = vmul.f32 %v1256_v54, %v1905_v49  ;;  %v1247_v14 = vsel %vm1231_vm0, %v1223_v3, %v1239_v29 }
 0x183   : > { %v1255_v58 = vadd.f32 1.0, %v1247_v14 }
 0x184   : > { %1272 = vst [vmem:[%s2219_s30] sm:$0xff] %v1264_v45 }
 0x185   : > { %v1263_v11 = vmul.f32 %v1255_v58, %v871_v26 }
 0x187   : > { %v1271_v46 = vmul.f32 %v1263_v11, %v2137_v28 }
 0x189   : > { %1279 = vst [vmem:[%s2219_s30 + $0x38] sm:$0xff] %v1271_v46 }
 0x18a PF: > { %s14_s15 = sadd.s32 1, %s1444_s15  }
 0x18b   : > { %p11_p4 = scmp.ge.s32.totalorder %s14_s15, 4  }
 0x18d   :  { %13 = sbr.rel (!%p11_p4) target bundleno = 1 (0x1), region = 69 }

// kernel: cross_spatial_ffn.1
= control target key start
LH: loop header
LB: loop body
LE: loop exit
PB: predicated region body
PF: predicated region fallthrough
CT: control target
= control target key end

     0   :  { %s1472_s15 = smov 0   ;;  %s2319_s0 = inlined_call_operand.vmem [shape: f32[128,128], index: 0, kind: input, shape index: {}]   ;;  %s2320_s1 = inlined_call_operand.vmem [shape: f32[128,128], index: 1, kind: input, shape index: {}]   ;;  %s2321_s2 = inlined_call_operand.vmem [shape: f32[128,384], index: 2, kind: input, shape index: {}]   ;;  %s2322_s3 = inlined_call_operand.vmem [shape: f32[128,384], index: 3, kind: input, shape index: {}]   ;;  %s2323_s4 = inlined_call_operand.vmem [shape: f32[128,128], index: 4, kind: output, shape index: {}]  }
   0x1 LB: > { %s1348_s16 = sadd.s32 4294967295, %s1444_s15   ;;  %p1352_p0 = scmp.ge.s32.totalorder %s1444_s15, 1  ;;  %s1444_s15 = sphi %s1472_s15, %s14_s15  }
   0x2   : > { %p174_p1 = scmp.lt.s32.totalorder %s1444_s15, 3 }
   0x4   : > { %p175_p2 = pnand %p1352_p0, %p174_p1 }
   0x5   : > { %s1353_s25 = sshll.u32 (!%p175_p2), %s1348_s16, 3 }
   0x6   : > { %178 = sbr.rel (%p175_p2) target bundleno = 394 (0x18a), region = 36  ;;  %p206_p3 = scmp.lt.s32.totalorder (!%p175_p2), %s1353_s25, 15 }
   0xb   : > { %v429_v0 = vld [vmem:[%s2321_s2 + $0x168] sm:$0xff]  ;;  %v430_v1 = vld [vmem:[%s2321_s2 + $0x170] sm:$0xff]  ;;  %v427_v3 = vld [vmem:[%s2321_s2 + $0x158] sm:$0xff]  ;;  %s2330_s25 = smov (!%p206_p3, %s1353_s25), 15 }
   0xc   : > { %v426_v2 = vld [vmem:[%s2321_s2 + $0x150] sm:$0xff]  ;;  %432 = vmatpush.msra.mxu0 %v429_v0  ;;  %1365 = vmatpush.msra.mxu2 %v429_v0  ;;  %v423_v4 = vld [vmem:[%s2321_s2 + $0x138] sm:$0xff]  ;;  %v424_v5 = vld [vmem:[%s2321_s2 + $0x140] sm:$0xff]  ;;  %s1563_s23 = sshll.u32 %s2330_s25, 3 }
   0xd   : > { %473 = vmatpush.msra.mxu1 %v430_v1  ;;  %1381 = vmatpush.msra.mxu3 %v430_v1  ;;  %v420_v6 = vld [vmem:[%s2321_s2 + $0x120] sm:$0xff]  ;;  %v421_v7 = vld [vmem:[%s2321_s2 + $0x128] sm:$0xff]  ;;  %v418_v9 = vld [vmem:[%s2321_s2 + $0x110] sm:$0xff]  ;;  %s1578_s16 = scalar_lea.vmem %s2319_s0, %s1563_s23  ;;  %s1798_s8 = scalar_lea.vmem %s2320_s1, %s1563_s23 }
   0xe   : > { %433 = vmatpush.msra.mxu0 %v426_v2  ;;  %1366 = vmatpush.msra.mxu2 %v426_v2  ;;  %v417_v8 = vld [vmem:[%s2321_s2 + $0x108] sm:$0xff]  ;;  %v414_v10 = vld [vmem:[%s2321_s2 + $0xf0] sm:$0xff]  ;;  %v415_v11 = vld [vmem:[%s2321_s2 + $0xf8] sm:$0xff]  ;;  %s2219_s30 = scalar_lea.vmem %s2323_s4, %s1563_s23 }
   0xf   : > { %474 = vmatpush.msra.mxu1 %v427_v3  ;;  %1382 = vmatpush.msra.mxu3 %v427_v3  ;;  %v411_v12 = vld [vmem:[%s2321_s2 + $0xd8] sm:$0xff]  ;;  %v412_v13 = vld [vmem:[%s2321_s2 + $0xe0] sm:$0xff]  ;;  %v409_v15 = vld [vmem:[%s2321_s2 + $0xc8] sm:$0xff] }
  0x10   : > { %434 = vmatpush.msra.mxu0 %v423_v4  ;;  %1367 = vmatpush.msra.mxu2 %v423_v4  ;;  %v408_v14 = vld [vmem:[%s2321_s2 + $0xc0] sm:$0xff]  ;;  %v405_v16 = vld [vmem:[%s2321_s2 + $0xa8] sm:$0xff]  ;;  %v406_v17 = vld [vmem:[%s2321_s2 + $0xb0] sm:$0xff] }
  0x11   : > { %475 = vmatpush.msra.mxu1 %v424_v5  ;;  %1383 = vmatpush.msra.mxu3 %v424_v5  ;;  %v402_v18 = vld [vmem:[%s2321_s2 + $0x90] sm:$0xff]  ;;  %v403_v19 = vld [vmem:[%s2321_s2 + $0x98] sm:$0xff]  ;;  %v400_v21 = vld [vmem:[%s2321_s2 + $0x80] sm:$0xff] }
  0x12   : > { %435 = vmatpush.msra.mxu0 %v420_v6  ;;  %1368 = vmatpush.msra.mxu2 %v420_v6  ;;  %v399_v20 = vld [vmem:[%s2321_s2 + $0x78] sm:$0xff]  ;;  %v396_v22 = vld [vmem:[%s2321_s2 + $0x60] sm:$0xff]  ;;  %v397_v23 = vld [vmem:[%s2321_s2 + $0x68] sm:$0xff] }
  0x13   : > { %476 = vmatpush.msra.mxu1 %v421_v7  ;;  %1384 = vmatpush.msra.mxu3 %v421_v7  ;;  %v393_v24 = vld [vmem:[%s2321_s2 + $0x48] sm:$0xff]  ;;  %v394_v25 = vld [vmem:[%s2321_s2 + $0x50] sm:$0xff]  ;;  %v391_v27 = vld [vmem:[%s2321_s2 + $0x38] sm:$0xff] }
  0x14   : > { %436 = vmatpush.msra.mxu0 %v417_v8  ;;  %1369 = vmatpush.msra.mxu2 %v417_v8  ;;  %v390_v26 = vld [vmem:[%s2321_s2 + $0x30] sm:$0xff]  ;;  %v387_v28 = vld [vmem:[%s2321_s2 + $0x18] sm:$0xff]  ;;  %v388_v29 = vld [vmem:[%s2321_s2 + $0x20] sm:$0xff] }
  0x15   : > { %477 = vmatpush.msra.mxu1 %v418_v9  ;;  %1385 = vmatpush.msra.mxu3 %v418_v9  ;;  %v384_v30 = vld [vmem:[%s2321_s2] sm:$0xff]  ;;  %v385_v31 = vld [vmem:[%s2321_s2 + $0x8] sm:$0xff]  ;;  %v431_v35 = vld [vmem:[%s2321_s2 + $0x178] sm:$0xff] }
  0x16   : > { %437 = vmatpush.msra.mxu0 %v414_v10  ;;  %1370 = vmatpush.msra.mxu2 %v414_v10  ;;  %v1587_v32 = vld [vmem:[%s1578_s16] sm:$0xff]  ;;  %v674_v34 = vld [vmem:[%s2322_s3 + $0x168] sm:$0xff]  ;;  %v676_v36 = vld [vmem:[%s2322_s3 + $0x178] sm:$0xff] }
  0x17   : > { %478 = vmatpush.msra.mxu1 %v415_v11  ;;  %1386 = vmatpush.msra.mxu3 %v415_v11  ;;  %v1590_v33 = vld [vmem:[%s1578_s16 + $0x20] sm:$0xff]  ;;  %v675_v37 = vld [vmem:[%s2322_s3 + $0x170] sm:$0xff]  ;;  %v672_v41 = vld [vmem:[%s2322_s3 + $0x158] sm:$0xff] }
  0x18   : > { %438 = vmatpush.msra.mxu0 %v411_v12  ;;  %1371 = vmatpush.msra.mxu2 %v411_v12  ;;  %v671_v38 = vld [vmem:[%s2322_s3 + $0x150] sm:$0xff]  ;;  %v428_v39 = vld [vmem:[%s2321_s2 + $0x160] sm:$0xff]  ;;  %v668_v42 = vld [vmem:[%s2322_s3 + $0x138] sm:$0xff] }
  0x19   : > { %479 = vmatpush.msra.mxu1 %v412_v13  ;;  %1387 = vmatpush.msra.mxu3 %v412_v13  ;;  %v673_v40 = vld [vmem:[%s2322_s3 + $0x160] sm:$0xff]  ;;  %v425_v43 = vld [vmem:[%s2321_s2 + $0x148] sm:$0xff]  ;;  %v422_v47 = vld [vmem:[%s2321_s2 + $0x130] sm:$0xff] }
  0x1a   : > { %439 = vmatpush.msra.mxu0 %v408_v14  ;;  %1372 = vmatpush.msra.mxu2 %v408_v14  ;;  %v670_v44 = vld [vmem:[%s2322_s3 + $0x148] sm:$0xff]  ;;  %v669_v45 = vld [vmem:[%s2322_s3 + $0x140] sm:$0xff]  ;;  %v667_v48 = vld [vmem:[%s2322_s3 + $0x130] sm:$0xff] }
  0x1b   : > { %480 = vmatpush.msra.mxu1 %v409_v15  ;;  %1388 = vmatpush.msra.mxu3 %v409_v15  ;;  %v665_v46 = vld [vmem:[%s2322_s3 + $0x120] sm:$0xff]  ;;  %v1642_v49 = vld [vmem:[%s1578_s16 + $0x8] sm:$0xff]  ;;  %v419_v51 = vld [vmem:[%s2321_s2 + $0x118] sm:$0xff] }
  0x1c   : > { %440 = vmatpush.msra.mxu0 %v405_v16  ;;  %1373 = vmatpush.msra.mxu2 %v405_v16  ;;  %v1645_v50 = vld [vmem:[%s1578_s16 + $0x28] sm:$0xff]  ;;  %v664_v53 = vld [vmem:[%s2322_s3 + $0x118] sm:$0xff]  ;;  %v416_v54 = vld [vmem:[%s2321_s2 + $0x100] sm:$0xff] }
  0x1d   : > { %481 = vmatpush.msra.mxu1 %v406_v17  ;;  %1389 = vmatpush.msra.mxu3 %v406_v17  ;;  %v662_v52 = vld [vmem:[%s2322_s3 + $0x108] sm:$0xff]  ;;  %v659_v56 = vld [vmem:[%s2322_s3 + $0xf0] sm:$0xff]  ;;  %v661_v57 = vld [vmem:[%s2322_s3 + $0x100] sm:$0xff] }
  0x1e   : > { %441 = vmatpush.msra.mxu0 %v402_v18  ;;  %1374 = vmatpush.msra.mxu2 %v402_v18  ;;  %v666_v55 = vld [vmem:[%s2322_s3 + $0x128] sm:$0xff]  ;;  %v663_v59 = vld [vmem:[%s2322_s3 + $0x110] sm:$0xff]  ;;  %v656_v60 = vld [vmem:[%s2322_s3 + $0xd8] sm:$0xff] }
  0x1f   : > { %482 = vmatpush.msra.mxu1 %v403_v19  ;;  %1390 = vmatpush.msra.mxu3 %v403_v19  ;;  %v413_v58 = vld [vmem:[%s2321_s2 + $0xe8] sm:$0xff]  ;;  %v410_v62 = vld [vmem:[%s2321_s2 + $0xd0] sm:$0xff]  ;;  %v653_v0 = vld [vmem:[%s2322_s3 + $0xc0] sm:$0xff] }
  0x20   : > { %442 = vmatpush.msra.mxu0 %v399_v20  ;;  %1375 = vmatpush.msra.mxu2 %v399_v20  ;;  %v658_v61 = vld [vmem:[%s2322_s3 + $0xe8] sm:$0xff]  ;;  %v1688_v63 = vld [vmem:[%s1578_s16 + $0x10] sm:$0xff]  ;;  %v407_v3 = vld [vmem:[%s2321_s2 + $0xb8] sm:$0xff] }
  0x21   : > { %483 = vmatpush.msra.mxu1 %v400_v21  ;;  %1391 = vmatpush.msra.mxu3 %v400_v21  ;;  %v655_v1 = vld [vmem:[%s2322_s3 + $0xd0] sm:$0xff]  ;;  %v650_v4 = vld [vmem:[%s2322_s3 + $0xa8] sm:$0xff]  ;;  %v652_v5 = vld [vmem:[%s2322_s3 + $0xb8] sm:$0xff] }
  0x22   : > { %443 = vmatpush.msra.mxu0 %v396_v22  ;;  %1376 = vmatpush.msra.mxu2 %v396_v22  ;;  %v1697_v2 = vld [vmem:[%s1578_s16 + $0x30] sm:$0xff]  ;;  %v404_v6 = vld [vmem:[%s2321_s2 + $0xa0] sm:$0xff]  ;;  %v660_v7 = vld [vmem:[%s2322_s3 + $0xf8] sm:$0xff] }
  0x23   : > { %484 = vmatpush.msra.mxu1 %v397_v23  ;;  %1392 = vmatpush.msra.mxu3 %v397_v23  ;;  %v647_v8 = vld [vmem:[%s2322_s3 + $0x90] sm:$0xff]  ;;  %v649_v9 = vld [vmem:[%s2322_s3 + $0xa0] sm:$0xff]  ;;  %v401_v10 = vld [vmem:[%s2321_s2 + $0x88] sm:$0xff] }
  0x24   : > { %444 = vmatpush.msra.mxu0 %v393_v24  ;;  %1377 = vmatpush.msra.mxu2 %v393_v24  ;;  %v657_v11 = vld [vmem:[%s2322_s3 + $0xe0] sm:$0xff]  ;;  %v644_v12 = vld [vmem:[%s2322_s3 + $0x78] sm:$0xff]  ;;  %v646_v13 = vld [vmem:[%s2322_s3 + $0x88] sm:$0xff] }
  0x25   : > { %485 = vmatpush.msra.mxu1 %v394_v25  ;;  %1393 = vmatpush.msra.mxu3 %v394_v25  ;;  %v398_v14 = vld [vmem:[%s2321_s2 + $0x70] sm:$0xff]  ;;  %v1740_v15 = vld [vmem:[%s1578_s16 + $0x18] sm:$0xff]  ;;  %v641_v16 = vld [vmem:[%s2322_s3 + $0x60] sm:$0xff] }
  0x26   : > { %445 = vmatpush.msra.mxu0 %v390_v26  ;;  %1378 = vmatpush.msra.mxu2 %v390_v26  ;;  %v643_v17 = vld [vmem:[%s2322_s3 + $0x70] sm:$0xff]  ;;  %v1749_v18 = vld [vmem:[%s1578_s16 + $0x38] sm:$0xff]  ;;  %v654_v19 = vld [vmem:[%s2322_s3 + $0xc8] sm:$0xff] }
  0x27   : > { %486 = vmatpush.msra.mxu1 %v391_v27  ;;  %1394 = vmatpush.msra.mxu3 %v391_v27  ;;  %v638_v20 = vld [vmem:[%s2322_s3 + $0x48] sm:$0xff]  ;;  %v395_v21 = vld [vmem:[%s2321_s2 + $0x58] sm:$0xff]  ;;  %v651_v23 = vld [vmem:[%s2322_s3 + $0xb0] sm:$0xff] }
  0x28   : > { %446 = vmatpush.msra.mxu0 %v387_v28  ;;  %1379 = vmatpush.msra.mxu2 %v387_v28  ;;  %v640_v22 = vld [vmem:[%s2322_s3 + $0x58] sm:$0xff]  ;;  %v635_v24 = vld [vmem:[%s2322_s3 + $0x30] sm:$0xff]  ;;  %v392_v25 = vld [vmem:[%s2321_s2 + $0x40] sm:$0xff] }
  0x29   : > { %487 = vmatpush.msra.mxu1 %v388_v29  ;;  %1395 = vmatpush.msra.mxu3 %v388_v29  ;;  %v637_v26 = vld [vmem:[%s2322_s3 + $0x40] sm:$0xff]  ;;  %v648_v27 = vld [vmem:[%s2322_s3 + $0x98] sm:$0xff]  ;;  %v389_v29 = vld [vmem:[%s2321_s2 + $0x28] sm:$0xff] }
  0x2a   : > { %447 = vmatpush.msra.mxu0 %v384_v30  ;;  %1380 = vmatpush.msra.mxu2 %v384_v30  ;;  %v632_v28 = vld [vmem:[%s2322_s3 + $0x18] sm:$0xff]  ;;  %v634_v30 = vld [vmem:[%s2322_s3 + $0x28] sm:$0xff] }
  0x2b   : > { %488 = vmatpush.msra.mxu1 %v385_v31  ;;  %1396 = vmatpush.msra.mxu3 %v385_v31  ;;  %v645_v31 = vld [vmem:[%s2322_s3 + $0x80] sm:$0xff] }
  0x2c   : > { %448 = vmatmul.f32.vlgmr.msra.gmra.mxu0 %v1587_v32  ;;  %460 = vmatmul.f32.vlgmr.msra.gmra.mxu2 %v1590_v33 }
  0x2d   : > { %489 = vmatmul.f32.vlgmr.msra.gmra.mxu1 %v1587_v32  ;;  %501 = vmatmul.f32.vlgmr.msra.gmra.mxu3 %v1590_v33 }
  0x2e   : > { %677 = vmatpush.msrb.mxu3 %v674_v34  ;;  %514 = vmatpush.msrb.mxu2 %v431_v35  ;;  %v629_v34 = vld [vmem:[%s2322_s3] sm:$0xff]  ;;  %v386_v35 = vld [vmem:[%s2321_s2 + $0x10] sm:$0xff] }
  0x2f   : > { %759 = vmatpush.msrb.mxu1 %v676_v36  ;;  %718 = vmatpush.msrb.mxu0 %v675_v37  ;;  %v631_v36 = vld [vmem:[%s2322_s3 + $0x10] sm:$0xff]  ;;  %v621_v37 = vld [vmem:[%s1798_s8] sm:$0xff] }
  0x30   : > { %678 = vmatpush.msrb.mxu3 %v671_v38  ;;  %515 = vmatpush.msrb.mxu2 %v428_v39  ;;  %v642_v38 = vld [vmem:[%s2322_s3 + $0x68] sm:$0xff]  ;;  %v639_v39 = vld [vmem:[%s2322_s3 + $0x50] sm:$0xff] }
  0x31   : > { %760 = vmatpush.msrb.mxu1 %v673_v40  ;;  %719 = vmatpush.msrb.mxu0 %v672_v41  ;;  %v636_v40 = vld [vmem:[%s2322_s3 + $0x38] sm:$0xff]  ;;  %v633_v41 = vld [vmem:[%s2322_s3 + $0x20] sm:$0xff] }
  0x32   : > { %679 = vmatpush.msrb.mxu3 %v668_v42  ;;  %516 = vmatpush.msrb.mxu2 %v425_v43  ;;  %v630_v42 = vld [vmem:[%s2322_s3 + $0x8] sm:$0xff]  ;;  %v623_v43 = vld [vmem:[%s1798_s8 + $0x10] sm:$0xff] }
  0x33   : > { %761 = vmatpush.msrb.mxu1 %v670_v44  ;;  %720 = vmatpush.msrb.mxu0 %v669_v45  ;;  %v624_v44 = vld [vmem:[%s1798_s8 + $0x18] sm:$0xff]  ;;  %v625_v45 = vld [vmem:[%s1798_s8 + $0x20] sm:$0xff] }
  0x34   : > { %680 = vmatpush.msrb.mxu3 %v665_v46  ;;  %517 = vmatpush.msrb.mxu2 %v422_v47  ;;  %v626_v46 = vld [vmem:[%s1798_s8 + $0x28] sm:$0xff]  ;;  %v627_v47 = vld [vmem:[%s1798_s8 + $0x30] sm:$0xff] }
  0x35   : > { %762 = vmatpush.msrb.mxu1 %v667_v48  ;;  %451 = vmatmul.f32.gmra.mxu0 %v1642_v49  ;;  %v628_v48 = vld [vmem:[%s1798_s8 + $0x38] sm:$0xff] }
  0x36   : > { %463 = vmatmul.f32.gmra.mxu2 %v1645_v50  ;;  %492 = vmatmul.f32.gmra.mxu1 %v1642_v49 }
  0x37   : > { %504 = vmatmul.f32.gmra.mxu3 %v1645_v50  ;;  %518 = vmatpush.msrb.mxu2 %v419_v51  ;;  %v223_v51 = vlaneseq }
  0x38   : > { %681 = vmatpush.msrb.mxu3 %v662_v52  ;;  %763 = vmatpush.msrb.mxu1 %v664_v53 }
  0x39   : > { %519 = vmatpush.msrb.mxu2 %v416_v54  ;;  %721 = vmatpush.msrb.mxu0 %v666_v55 }
  0x3a   : > { %682 = vmatpush.msrb.mxu3 %v659_v56  ;;  %764 = vmatpush.msrb.mxu1 %v661_v57 }
  0x3b   : > { %520 = vmatpush.msrb.mxu2 %v413_v58  ;;  %722 = vmatpush.msrb.mxu0 %v663_v59 }
  0x3c   : > { %683 = vmatpush.msrb.mxu3 %v656_v60  ;;  %765 = vmatpush.msrb.mxu1 %v658_v61 }
  0x3d   : > { %521 = vmatpush.msrb.mxu2 %v410_v62  ;;  %454 = vmatmul.f32.gmra.mxu0 %v1688_v63 }
  0x3e   : > { %684 = vmatpush.msrb.mxu3 %v653_v0  ;;  %766 = vmatpush.msrb.mxu1 %v655_v1 }
  0x3f   : > { %466 = vmatmul.f32.gmra.mxu2 %v1697_v2  ;;  %495 = vmatmul.f32.gmra.mxu1 %v1688_v63 }
  0x40   : > { %507 = vmatmul.f32.gmra.mxu3 %v1697_v2  ;;  %522 = vmatpush.msrb.mxu2 %v407_v3 }
  0x41   : > { %685 = vmatpush.msrb.mxu3 %v650_v4  ;;  %767 = vmatpush.msrb.mxu1 %v652_v5 }
  0x42   : > { %523 = vmatpush.msrb.mxu2 %v404_v6  ;;  %723 = vmatpush.msrb.mxu0 %v660_v7 }
  0x43   : > { %686 = vmatpush.msrb.mxu3 %v647_v8  ;;  %768 = vmatpush.msrb.mxu1 %v649_v9 }
  0x44   : > { %524 = vmatpush.msrb.mxu2 %v401_v10  ;;  %724 = vmatpush.msrb.mxu0 %v657_v11 }
  0x45   : > { %687 = vmatpush.msrb.mxu3 %v644_v12  ;;  %769 = vmatpush.msrb.mxu1 %v646_v13 }
  0x46   : > { %525 = vmatpush.msrb.mxu2 %v398_v14  ;;  %457 = vmatmul.f32.gmra.mxu0 %v1740_v15  ;;  %v1446_v14 = vmov 0.0  }
  0x47   : > { %688 = vmatpush.msrb.mxu3 %v641_v16  ;;  %770 = vmatpush.msrb.mxu1 %v643_v17 }
  0x48   : > { %469 = vmatmul.f32.gmra.mxu2 %v1749_v18  ;;  %498 = vmatmul.f32.gmra.mxu1 %v1740_v15 }
  0x49   : > { %510 = vmatmul.f32.gmra.mxu3 %v1749_v18  ;;  %725 = vmatpush.msrb.mxu0 %v654_v19 }
  0x4a   : > { %689 = vmatpush.msrb.mxu3 %v638_v20  ;;  %526 = vmatpush.msrb.mxu2 %v395_v21 }
  0x4b   : > { %771 = vmatpush.msrb.mxu1 %v640_v22  ;;  %726 = vmatpush.msrb.mxu0 %v651_v23 }
  0x4c   : > { %690 = vmatpush.msrb.mxu3 %v635_v24  ;;  %527 = vmatpush.msrb.mxu2 %v392_v25 }
  0x4d   : > { %772 = vmatpush.msrb.mxu1 %v637_v26  ;;  %727 = vmatpush.msrb.mxu0 %v648_v27 }
  0x4e   : > { %691 = vmatpush.msrb.mxu3 %v632_v28  ;;  %528 = vmatpush.msrb.mxu2 %v389_v29 }
  0x4f   : > { %773 = vmatpush.msrb.mxu1 %v634_v30  ;;  %728 = vmatpush.msrb.mxu0 %v645_v31 }
  0x50   : > { %692 = vmatpush.msrb.mxu3 %v629_v34  ;;  %529 = vmatpush.msrb.mxu2 %v386_v35 }
  0x51   : > { %774 = vmatpush.msrb.mxu1 %v631_v36  ;;  %530 = vmatmul.f32.vlgmr.msrb.gmra.mxu2 %v1587_v32  ;;  %v622_v32 = vld [vmem:[%s1798_s8 + $0x8] sm:$0xff] }
  0x52   : > { %693 = vmatmul.f32.vlgmr.msrb.gmra.mxu3 %v621_v37  ;;  %729 = vmatpush.msrb.mxu0 %v642_v38 }
  0x53   : > { %775 = vmatmul.f32.vlgmr.msrb.gmra.mxu1 %v621_v37 }
  0x54   : > { %730 = vmatpush.msrb.mxu0 %v639_v39 }
  0x56   : > { %731 = vmatpush.msrb.mxu0 %v636_v40 }
  0x58   : > { %732 = vmatpush.msrb.mxu0 %v633_v41 }
  0x59   : > { %533 = vmatmul.f32.gmra.mxu2 %v1642_v49 }
  0x5a   : > { %696 = vmatmul.f32.gmra.mxu3 %v622_v32  ;;  %733 = vmatpush.msrb.mxu0 %v630_v42 }
  0x5b   : > { %778 = vmatmul.f32.gmra.mxu1 %v622_v32  ;;  %734 = vmatmul.f32.vlgmr.msrb.gmra.mxu0 %v621_v37 }
  0x61   : > { %536 = vmatmul.f32.gmra.mxu2 %v1688_v63 }
  0x62   : > { %699 = vmatmul.f32.gmra.mxu3 %v623_v43 }
  0x63   : > { %781 = vmatmul.f32.gmra.mxu1 %v623_v43  ;;  %737 = vmatmul.f32.gmra.mxu0 %v622_v32 }
  0x69   : > { %539 = vmatmul.f32.gmra.mxu2 %v1740_v15 }
  0x6a   : > { %702 = vmatmul.f32.gmra.mxu3 %v624_v44 }
  0x6b   : > { %784 = vmatmul.f32.gmra.mxu1 %v624_v44  ;;  %740 = vmatmul.f32.gmra.mxu0 %v623_v43 }
  0x71   : > { %542 = vmatmul.f32.gmra.mxu2 %v1590_v33 }
  0x72   : > { %705 = vmatmul.f32.gmra.mxu3 %v625_v45 }
  0x73   : > { %787 = vmatmul.f32.gmra.mxu1 %v625_v45  ;;  %743 = vmatmul.f32.gmra.mxu0 %v624_v44 }
  0x79   : > { %545 = vmatmul.f32.gmra.mxu2 %v1645_v50  ;;  %v1840_v50 = vshrl.u32 %v223_v51, 7 }
  0x7a   : > { %708 = vmatmul.f32.gmra.mxu3 %v626_v46 }
  0x7b   : > { %790 = vmatmul.f32.gmra.mxu1 %v626_v46  ;;  %746 = vmatmul.f32.gmra.mxu0 %v625_v45  ;;  %vm563_vm0 = vcmp.lt.s32.totalorder %v1840_v50, 1  ;;  %v228_v62 = vadd.s32 32, %v1840_v50  ;;  %v236_v17 = vand.u32 31, %v1840_v50  ;;  %vm596_vm3 = vcmp.lt.s32.totalorder %v1840_v50, 7 }
  0x7d   : > { %v264_v7 = vand.u32 31, %v228_v62  ;;  %vm328_vm2 = vcmp.ne.s32.totalorder %v236_v17, 0 }
  0x7e   : > { %v1874_v26 = vsel %vm328_vm2, 1.0, %v1446_v14 }
  0x7f   : > { %vm332_vm1 = vcmp.ne.s32.totalorder %v264_v7, 0 }
  0x80   : > { %v1857_v15 = vsel %vm332_vm1, 1.0, %v1446_v14 }
  0x81   : > { %548 = vmatmul.f32.gmra.mxu2 %v1697_v2 }
  0x82   : > { %711 = vmatmul.f32.gmra.mxu3 %v627_v47 }
  0x83   : > { %793 = vmatmul.f32.gmra.mxu1 %v627_v47  ;;  %749 = vmatmul.f32.gmra.mxu0 %v626_v46 }
  0x89   : > { %551 = vmatmul.f32.gmra.mxu2 %v1749_v18 }
  0x8a   : > { %714 = vmatmul.f32.gmra.mxu3 %v628_v48 }
  0x8b   : > { %796 = vmatmul.f32.gmra.mxu1 %v628_v48  ;;  %752 = vmatmul.f32.gmra.mxu0 %v627_v47 }
  0x93   : > { %755 = vmatmul.f32.gmra.mxu0 %v628_v48 }
  0xa9   : > { %v449_v33 = vpop.f32.mrf.mxu0 }
  0xaa   : > { %v490_v49 = vpop.f32.mrf.mxu1  ;;  %v555_v54 = vrot.slane %v449_v33, 7 }
  0xaf   : > { %v461_v52 = vpop.f32.mrf.mxu2 }
  0xb0   : > { %v502_v53 = vpop.f32.mrf.mxu3  ;;  %v559_v60 = vrot.slane %v461_v52, 7 }
  0xb2   : > { %v452_v55 = vpop.f32.mrf.mxu0 }
  0xb3   : > { %v556_v56 = vrot.slane %v452_v55, 7  ;;  %v493_v57 = vpop.f32.mrf.mxu1 }
  0xb5   : > { %v570_v58 = vsel %vm563_vm0, %v555_v54, %v556_v56 }
  0xb6   : > { %v1845_v59 = vadd.f32 %v570_v58, %v493_v57 }
  0xb9   : > { %v464_v61 = vpop.f32.mrf.mxu2 }
  0xba   : > { %v560_v63 = vrot.slane %v464_v61, 7  ;;  %v505_v0 = vpop.f32.mrf.mxu3  ;;  %v455_v1 = vpop.f32.mrf.mxu0 }
  0xbb   : > { %v557_v2 = vrot.slane %v455_v1, 7 }
  0xbc   : > { %v566_v3 = vsel %vm563_vm0, %v559_v60, %v560_v63  ;;  %v496_v4 = vpop.f32.mrf.mxu1 }
  0xbd   : > { %v1850_v5 = vadd.f32 %v566_v3, %v505_v0  ;;  %v569_v6 = vsel %vm563_vm0, %v556_v56, %v557_v2  ;;  %v227_v0 = vadd.s32 24, %v1840_v50 }
  0xbe   : > { %v1854_v8 = vadd.f32 %v569_v6, %v496_v4 }
  0xc2   : > { %v467_v9 = vpop.f32.mrf.mxu2 }
  0xc3   : > { %v561_v10 = vrot.slane %v467_v9, 7  ;;  %v508_v11 = vpop.f32.mrf.mxu3  ;;  %v458_v12 = vpop.f32.mrf.mxu0 }
  0xc4   : > { %v558_v13 = vrot.slane %v458_v12, 7  ;;  %v257_v12 = vand.u32 31, %v227_v0 }
  0xc5   : > { %v565_v16 = vsel %vm563_vm0, %v560_v63, %v561_v10  ;;  %v499_v20 = vpop.f32.mrf.mxu1 }
  0xc6   : > { %v1862_v18 = vadd.f32 %v565_v16, %v508_v11  ;;  %v567_v19 = vsel %vm563_vm0, %v558_v13, %v559_v60  ;;  %v568_v21 = vsel %vm563_vm0, %v557_v2, %v558_v13  ;;  %vm355_vm4 = vcmp.ne.s32.totalorder %v257_v12, 31 }
  0xc7   : > { %v1868_v22 = vadd.f32 %v568_v21, %v499_v20  ;;  %v576_v23 = vmul.f32 %v1857_v15, %v567_v19 }
  0xc9   : > { %v1871_v24 = vadd.f32 %v576_v23, %v502_v53 }
  0xcb   : > { %v470_v25 = vpop.f32.mrf.mxu2 }
  0xcc   : > { %v562_v27 = vrot.slane %v470_v25, 7  ;;  %v511_v28 = vpop.f32.mrf.mxu3 }
  0xce   : > { %v571_v29 = vsel %vm563_vm0, %v562_v27, %v555_v54  ;;  %v564_v30 = vsel %vm563_vm0, %v561_v10, %v562_v27 }
  0xcf   : > { %v572_v31 = vmul.f32 %v1874_v26, %v571_v29  ;;  %v1881_v34 = vadd.f32 %v564_v30, %v511_v28 }
  0xd0   : > { %v1883_v35 = vpop.f32.mrf.mxu1 }
  0xd1   : > { %v580_v36 = vadd.f32 %v572_v31, %v490_v49  ;;  %v832_v39 = vrot.slane %v1883_v35, 1 }
  0xd4   : > { %v1885_v37 = vpop.f32.mrf.mxu2 }
  0xd5   : > { %v1887_v38 = vpop.f32.mrf.mxu3  ;;  %v588_v42 = vrot.slane %v1885_v37, 1 }
  0xd6   : > { %v800_v47 = vrot.slane %v1887_v38, 7 }
  0xd8   : > { %v779_v40 = vpop.f32.mrf.mxu1  ;;  %v1891_v41 = vpop.f32.mrf.mxu0 }
  0xd9   : > { %v833_v32 = vrot.slane %v779_v40, 1 }
  0xdb   : > { %v1898_v43 = vsel %vm596_vm3, %v832_v39, %v833_v32 }
  0xdc   : > { %v534_v44 = vpop.f32.mrf.mxu2 }
  0xdd   : > { %v589_v45 = vrot.slane %v534_v44, 1  ;;  %v697_v46 = vpop.f32.mrf.mxu3 }
  0xde   : > { %v801_v48 = vrot.slane %v697_v46, 7 }
  0xdf   : > { %v603_v33 = vsel %vm596_vm3, %v588_v42, %v589_v45 }
  0xe0   : > { %v1905_v49 = vadd.f32 %v603_v33, %v580_v36  ;;  %v782_v51 = vpop.f32.mrf.mxu1  ;;  %v738_v52 = vpop.f32.mrf.mxu0  ;;  %v814_v53 = vsel %vm563_vm0, %v800_v47, %v801_v48  ;;  %v1361_v36 = vsel %vm355_vm4, 1.0, %v1446_v14 }
  0xe1   : > { %v834_v54 = vrot.slane %v782_v51, 1  ;;  %v825_v55 = vadd.f32 %v814_v53, %v738_v52 }
  0xe3   : > { %v845_v56 = vsel %vm596_vm3, %v833_v32, %v834_v54 }
  0xe4   : > { %v1913_v57 = vadd.f32 %v845_v56, %v825_v55  ;;  %v537_v58 = vpop.f32.mrf.mxu2 }
  0xe5   : > { %v590_v60 = vrot.slane %v537_v58, 1  ;;  %v700_v61 = vpop.f32.mrf.mxu3 }
  0xe6   : > { %v1916_v62 = vmul.f32 0.70710677, %v1913_v57  ;;  %v802_v63 = vrot.slane %v700_v61, 7 }
  0xe7   : > { %v602_v1 = vsel %vm596_vm3, %v589_v45, %v590_v60 }
  0xe8   : > { %v1922_v2 = vand.u32 2147483647, %v1916_v62  ;;  %v1925_v3 = vadd.f32 %v602_v1, %v1845_v59  ;;  %v785_v4 = vpop.f32.mrf.mxu1  ;;  %v741_v6 = vpop.f32.mrf.mxu0  ;;  %v813_v7 = vsel %vm563_vm0, %v801_v48, %v802_v63 }
  0xe9   : > { %v835_v9 = vrot.slane %v785_v4, 1  ;;  %v826_v10 = vadd.f32 %v813_v7, %v741_v6 }
  0xea   : > { %v889_v11 = vmul.f32 0.5, %v1922_v2 }
  0xeb   : > { %v844_v13 = vsel %vm596_vm3, %v834_v54, %v835_v9 }
  0xec   : > { %v897_v16 = vadd.f32 1.0, %v889_v11  ;;  %v1932_v17 = vadd.f32 %v844_v13, %v826_v10  ;;  %v540_v19 = vpop.f32.mrf.mxu2 }
  0xed   : > { %v591_v20 = vrot.slane %v540_v19, 1  ;;  %v703_v59 = vpop.f32.mrf.mxu3 }
  0xee   : > { %1406 = vrcp.f32 %v897_v16  ;;  %v1935_v21 = vmul.f32 0.70710677, %v1932_v17  ;;  %v803_v25 = vrot.slane %v703_v59, 7  ;;  %v930_v58 = vand.u32 2147483648, %v897_v16 }
  0xef   : > { %v601_v23 = vsel %vm596_vm3, %v590_v60, %v591_v20  ;;  %v928_v4 = vand.u32 2147483647, %v897_v16  ;;  %vm924_vm6 = vweird.f32 %v897_v16 }
  0xf0   : > { %v1940_v27 = vadd.f32 %v601_v23, %v1854_v8  ;;  %v788_v28 = vpop.f32.mrf.mxu1  ;;  %v744_v29 = vpop.f32.mrf.mxu0  ;;  %v1943_v30 = vand.u32 2147483647, %v1935_v21  ;;  %v812_v40 = vsel %vm563_vm0, %v802_v63, %v803_v25  ;;  %v931_v19 = vor.u32 1.1754944e-38, %v930_v58 }
  0xf1   : > { %v836_v31 = vrot.slane %v788_v28, 1  ;;  %v827_v46 = vadd.f32 %v812_v40, %v744_v29  ;;  %vm929_vm8 = vcmp.eq.f32.partialorder %v928_v4, 8.507059e+37 }
  0xf2   : > { %v890_v32 = vmul.f32 0.5, %v1943_v30 }
  0xf3   : > { %v843_v44 = vsel %vm596_vm3, %v835_v9, %v836_v31 }
  0xf4   : > { %v1407_v45 = vpop.eup %1406  ;;  %v851_v8 = vmul.f32 %v1361_v36, %v843_v44  ;;  %v543_v48 = vpop.f32.mrf.mxu2  ;;  %v1951_v51 = vadd.f32 1.0, %v890_v32 }
  0xf5   : > { %v920_v33 = vmul.f32 %v1407_v45, %v897_v16  ;;  %v706_v52 = vpop.f32.mrf.mxu3  ;;  %v592_v54 = vrot.slane %v543_v48, 1  ;;  %vm925_vm5 = vweird.f32 %v1407_v45 }
  0xf6   : > { %v1953_v53 = vadd.f32 %v851_v8, %v827_v46  ;;  %v804_v55 = vrot.slane %v706_v52, 7  ;;  %1408 = vrcp.f32 %v1951_v51  ;;  %vm926_vm7 = vmor %vm924_vm6, %vm925_vm5  ;;  %v943_v8 = vand.u32 2147483647, %v1951_v51 }
  0xf7   : > { %v921_v56 = vsub.f32 1.0, %v920_v33  ;;  %v600_v61 = vsel %vm596_vm3, %v591_v20, %v592_v54  ;;  %v945_v52 = vand.u32 2147483648, %v1951_v51  ;;  %vm939_vm10 = vweird.f32 %v1951_v51 }
  0xf8   : > { %v1957_v60 = vmul.f32 0.70710677, %v1953_v53  ;;  %v791_v63 = vpop.f32.mrf.mxu1  ;;  %v747_v0 = vpop.f32.mrf.mxu0  ;;  %v608_v6 = vmul.f32 %v1361_v36, %v600_v61  ;;  %v811_v10 = vsel %vm563_vm0, %v803_v25, %v804_v55  ;;  %vm944_vm12 = vcmp.eq.f32.partialorder %v943_v8, 8.507059e+37 }
  0xf9   : > { %v922_v1 = vmul.f32 %v1407_v45, %v921_v56  ;;  %v837_v9 = vrot.slane %v791_v63, 1  ;;  %v820_v13 = vmul.f32 %v1857_v15, %v811_v10 }
  0xfa   : > { %v1962_v7 = vand.u32 2147483647, %v1957_v60  ;;  %v1967_v12 = vadd.f32 %v608_v6, %v1868_v22 }
  0xfb   : > { %v923_v11 = vadd.f32 %v1407_v45, %v922_v1  ;;  %v828_v29 = vadd.f32 %v820_v13, %v747_v0  ;;  %v842_v15 = vsel %vm596_vm3, %v836_v31, %v837_v9  ;;  %v1169_v0 = vsub.f32 0.0, %v1922_v2 }
  0xfc   : > { %v891_v20 = vmul.f32 0.5, %v1962_v7  ;;  %v546_v59 = vpop.f32.mrf.mxu2  ;;  %v1409_v23 = vpop.eup %1408  ;;  %v946_v13 = vor.u32 1.1754944e-38, %v945_v52 }
  0xfd   : > { %v927_v28 = vsel %vm926_vm7, %v1407_v45, %v923_v11  ;;  %v593_v36 = vrot.slane %v546_v59, 1  ;;  %v1971_v40 = vpop.f32.mrf.mxu3  ;;  %v935_v16 = vmul.f32 %v1409_v23, %v1951_v51  ;;  %v1981_v44 = vadd.f32 %v842_v15, %v828_v29 }
  0xfe   : > { %v1973_v25 = vsel %vm929_vm8, %v931_v19, %v927_v28  ;;  %v1976_v22 = vadd.f32 1.0, %v891_v20  ;;  %vm940_vm9 = vweird.f32 %v1409_v23 }
  0xff   : > { %v1025_v32 = vmul.f32 0.17087276, %v1973_v25  ;;  %v599_v45 = vsel %vm596_vm3, %v592_v54, %v593_v36  ;;  %v936_v46 = vsub.f32 1.0, %v935_v16  ;;  %v1991_v56 = vmul.f32 0.70710677, %v1981_v44  ;;  %vm941_vm11 = vmor %vm939_vm10, %vm940_vm9 }
 0x100   : > { %1410 = vrcp.f32 %v1976_v22  ;;  %v1987_v48 = vpop.f32.mrf.mxu1  ;;  %v1994_v58 = vadd.f32 %v599_v45, %v1871_v24  ;;  %v805_v54 = vrot.slane %v1971_v40, 7  ;;  %v750_v61 = vpop.f32.mrf.mxu0  ;;  %vm954_vm14 = vweird.f32 %v1976_v22 }
 0x101   : > { %v1033_v33 = vadd.f32 -0.82215226, %v1025_v32  ;;  %v937_v31 = vmul.f32 %v1409_v23, %v936_v46  ;;  %v2000_v1 = vand.u32 2147483647, %v1991_v56  ;;  %v838_v6 = vrot.slane %v1987_v48, 1 }
 0x102   : > { %v810_v10 = vsel %vm563_vm0, %v804_v55, %v805_v54  ;;  %v231_v32 = vadd.s32 56, %v1840_v50 }
 0x103   : > { %v1041_v63 = vmul.f32 %v1033_v33, %v1973_v25  ;;  %v938_v4 = vadd.f32 %v1409_v23, %v937_v31  ;;  %v892_v19 = vmul.f32 0.5, %v2000_v1  ;;  %v829_v20 = vadd.f32 %v810_v10, %v750_v61 }
 0x104   : > { %v2006_v24 = vpop.f32.mrf.mxu2  ;;  %v841_v29 = vsel %vm596_vm3, %v837_v9, %v838_v6 }
 0x105   : > { %v1049_v11 = vadd.f32 1.4885159, %v1041_v63  ;;  %v942_v28 = vsel %vm941_vm11, %v1409_v23, %v938_v4  ;;  %v594_v51 = vrot.slane %v2006_v24, 1  ;;  %v2016_v15 = vpop.f32.mrf.mxu3  ;;  %v958_v23 = vand.u32 2147483647, %v1976_v22 }
 0x106   : > { %v1411_v59 = vpop.eup %1410  ;;  %v2013_v16 = vsel %vm944_vm12, %v946_v13, %v942_v28  ;;  %v2021_v46 = vadd.f32 1.0, %v892_v19  ;;  %v2023_v8 = vadd.f32 %v841_v29, %v829_v20  ;;  %v960_v63 = vand.u32 2147483648, %v1976_v22 }
 0x107   : > { %v1057_v40 = vmul.f32 %v1049_v11, %v1973_v25  ;;  %v950_v55 = vmul.f32 %v1411_v59, %v1976_v22  ;;  %v1026_v45 = vmul.f32 0.17087276, %v2013_v16  ;;  %v598_v52 = vsel %vm596_vm3, %v593_v36, %v594_v51 }
 0x108   : > { %v797_v9 = vpop.f32.mrf.mxu1  ;;  %1412 = vrcp.f32 %v2021_v46  ;;  %v806_v4 = vrot.slane %v2016_v15, 7  ;;  %vm955_vm13 = vweird.f32 %v1411_v59  ;;  %v285_v13 = vand.u32 31, %v231_v32  ;;  %v753_v28 = vpop.f32.mrf.mxu0 }
 0x109   : > { %v1065_v48 = vadd.f32 -1.135204, %v1057_v40  ;;  %v951_v33 = vsub.f32 1.0, %v950_v55  ;;  %v839_v31 = vrot.slane %v797_v9, 1  ;;  %v1034_v61 = vadd.f32 -0.82215226, %v1026_v45  ;;  %vm956_vm1 = vmor %vm954_vm14, %vm955_vm13 }
 0x10a   : > { %v2036_v20 = vmul.f32 0.70710677, %v2023_v8  ;;  %v2039_v36 = vadd.f32 %v598_v52, %v1850_v5  ;;  %vm959_vm15 = vcmp.eq.f32.partialorder %v958_v23, 8.507059e+37  ;;  %v961_v45 = vor.u32 1.1754944e-38, %v960_v63 }
 0x10b   : > { %v1073_v10 = vmul.f32 %v1065_v48, %v1973_v25  ;;  %v952_v11 = vmul.f32 %v1411_v59, %v951_v33  ;;  %v1042_v19 = vmul.f32 %v1034_v61, %v2013_v16  ;;  %v2045_v55 = vsel %vm596_vm3, %v839_v31, %v832_v39 }
 0x10c   : > { %v2048_v22 = vand.u32 2147483647, %v2036_v20  ;;  %v809_v5 = vsel %vm563_vm0, %v805_v54, %v806_v4  ;;  %v840_v35 = vsel %vm596_vm3, %v838_v6, %v839_v31  ;;  %v2058_v33 = vmul.f32 %v1169_v0, %v1922_v2  ;;  %v552_v0 = vpop.f32.mrf.mxu2 }
 0x10d   : > { %v1081_v29 = vadd.f32 0.27886808, %v1073_v10  ;;  %v953_v40 = vadd.f32 %v1411_v59, %v952_v11  ;;  %v1050_v32 = vadd.f32 1.4885159, %v1042_v19  ;;  %v830_v48 = vadd.f32 %v809_v5, %v753_v28 }
 0x10e   : > { %v1413_v39 = vpop.eup %1412  ;;  %v893_v63 = vmul.f32 0.5, %v2048_v22  ;;  %v1170_v54 = vsub.f32 0.0, %v1943_v30  ;;  %vm2071_vm2 = vcmp.ne.s32.totalorder %v285_v13, 31  ;;  %v975_v5 = vand.u32 2147483648, %v2021_v46 }
 0x10f   : > { %v1089_v9 = vmul.f32 %v1081_v29, %v1973_v25  ;;  %v957_v23 = vsel %vm956_vm1, %v1411_v59, %v953_v40  ;;  %v1058_v52 = vmul.f32 %v1050_v32, %v2013_v16  ;;  %v965_v59 = vmul.f32 %v1413_v39, %v2021_v46 }
 0x110   : > { %v2061_v61 = vsel %vm959_vm15, %v961_v45, %v957_v23  ;;  %v2067_v28 = vadd.f32 1.0, %v893_v63  ;;  %v2069_v6 = vadd.f32 %v840_v35, %v830_v48  ;;  %v973_v32 = vand.u32 2147483647, %v2021_v46 }
 0x111   : > { %v1097_v10 = vadd.f32 -0.18628806, %v1089_v9  ;;  %v1027_v11 = vmul.f32 0.17087276, %v2061_v61  ;;  %v1066_v19 = vadd.f32 -1.135204, %v1058_v52  ;;  %vm970_vm4 = vweird.f32 %v1413_v39 }
 0x112   : > { %v966_v40 = vsub.f32 1.0, %v965_v59  ;;  %1414 = vrcp.f32 %v2067_v28  ;;  %v595_v48 = vrot.slane %v552_v0, 1  ;;  %v2082_v52 = vmul.f32 %v1170_v54, %v1943_v30 }
 0x113   : > { %v1105_v31 = vmul.f32 %v1097_v10, %v1973_v25  ;;  %v1035_v29 = vadd.f32 -0.82215226, %v1027_v11  ;;  %v1074_v45 = vmul.f32 %v1066_v19, %v2013_v16  ;;  %v2085_v63 = vmul.f32 0.70710677, %v2069_v6 }
 0x114   : > { %v967_v23 = vmul.f32 %v1413_v39, %v966_v40  ;;  %v2090_v10 = vsel %vm2071_vm2, 1.0, %v1446_v14  ;;  %vm969_vm5 = vweird.f32 %v2021_v46  ;;  %vm974_vm7 = vcmp.eq.f32.partialorder %v973_v32, 8.507059e+37 }
 0x115   : > { %v1113_v9 = vadd.f32 0.09678418, %v1105_v31  ;;  %v1043_v13 = vmul.f32 %v1035_v29, %v2061_v61  ;;  %v1082_v35 = vadd.f32 0.27886808, %v1074_v45  ;;  %vm971_vm6 = vmor %vm969_vm5, %vm970_vm4  ;;  %v976_v30 = vor.u32 1.1754944e-38, %v975_v5 }
 0x116   : > { %v968_v19 = vadd.f32 %v1413_v39, %v967_v23  ;;  %v2097_v54 = vand.u32 2147483647, %v2085_v63  ;;  %v604_v29 = vsel %vm596_vm3, %v595_v48, %v588_v42  ;;  %v990_v42 = vand.u32 2147483648, %v2067_v28 }
 0x117   : > { %v1121_v11 = vmul.f32 %v1113_v9, %v1973_v25  ;;  %v1051_v59 = vadd.f32 1.4885159, %v1043_v13  ;;  %v1090_v0 = vmul.f32 %v1082_v35, %v2013_v16  ;;  %v988_v35 = vand.u32 2147483647, %v2067_v28 }
 0x118   : > { %v972_v14 = vsel %vm971_vm6, %v1413_v39, %v968_v19  ;;  %v1415_v40 = vpop.eup %1414  ;;  %v894_v32 = vmul.f32 0.5, %v2097_v54  ;;  %vm984_vm9 = vweird.f32 %v2067_v28  ;;  %vm1225_vm13 = vcmp.ge.f32.partialorder %v1916_v62, 0.0 }
 0x119   : > { %v1129_v31 = vadd.f32 0.37409195, %v1121_v11  ;;  %v1059_v2 = vmul.f32 %v1051_v59, %v2061_v61  ;;  %v1098_v46 = vadd.f32 -0.18628806, %v1090_v0  ;;  %v2105_v9 = vsel %vm974_vm7, %v976_v30, %v972_v14 }
 0x11a   : > { %v1028_v23 = vmul.f32 0.17087276, %v2105_v9  ;;  %v980_v39 = vmul.f32 %v1415_v40, %v2067_v28  ;;  %v2114_v11 = vadd.f32 1.0, %v894_v32  ;;  %vm985_vm8 = vweird.f32 %v1415_v40 }
 0x11b   : > { %v1137_v5 = vmul.f32 %v1129_v31, %v1973_v25  ;;  %v1067_v13 = vadd.f32 -1.135204, %v1059_v2  ;;  %v1106_v37 = vmul.f32 %v1098_v46, %v2013_v16  ;;  %v597_v31 = vsel %vm596_vm3, %v594_v51, %v595_v48  ;;  %vm986_vm3 = vmor %vm984_vm9, %vm985_vm8 }
 0x11c   : > { %v1036_v0 = vadd.f32 -0.82215226, %v1028_v23  ;;  %v981_v30 = vsub.f32 1.0, %v980_v39  ;;  %1416 = vrcp.f32 %v2114_v11  ;;  %vm2126_vm10 = vcmp.eq.f32.partialorder %v988_v35, 8.507059e+37 }
 0x11d   : > { %v1145_v59 = vadd.f32 1.0000237, %v1137_v5  ;;  %v1075_v19 = vmul.f32 %v1067_v13, %v2061_v61  ;;  %v1114_v14 = vadd.f32 0.09678418, %v1106_v37  ;;  %v612_v23 = vmul.f32 %v2090_v10, %v604_v29  ;;  %v715_v37 = vpop.f32.mrf.mxu3 }
 0x11e   : > { %v1044_v32 = vmul.f32 %v1036_v0, %v2105_v9  ;;  %v982_v45 = vmul.f32 %v1415_v40, %v981_v30  ;;  %v2134_v0 = vadd.f32 %v597_v31, %v1862_v18  ;;  %vm999_vm11 = vweird.f32 %v2114_v11 }
 0x11f   : > { %v1153_v2 = vmul.f32 %v1145_v59, %v1973_v25  ;;  %v1083_v46 = vadd.f32 0.27886808, %v1075_v19  ;;  %v1122_v5 = vmul.f32 %v1114_v14, %v2013_v16  ;;  %v991_v19 = vor.u32 1.1754944e-38, %v990_v42 }
 0x120   : > { %v1052_v51 = vadd.f32 1.4885159, %v1044_v32  ;;  %v983_v48 = vadd.f32 %v1415_v40, %v982_v45  ;;  %v2137_v28 = vadd.f32 %v612_v23, %v1881_v34  ;;  %v1003_v18 = vand.u32 2147483647, %v2114_v11 }
 0x121   : > { %v1161_v24 = vadd.f32 -1.2655122, %v1153_v2  ;;  %v1091_v39 = vmul.f32 %v1083_v46, %v2061_v61  ;;  %v1130_v59 = vadd.f32 0.37409195, %v1122_v5  ;;  %v807_v42 = vrot.slane %v715_v37, 7 }
 0x122   : > { %v1060_v29 = vmul.f32 %v1052_v51, %v2105_v9  ;;  %v987_v14 = vsel %vm986_vm3, %v1415_v40, %v983_v48  ;;  %v1417_v2 = vpop.eup %1416  ;;  %v1005_v23 = vand.u32 2147483648, %v2114_v11  ;;  %v855_v50 = vmul.f32 %v2090_v10, %v2045_v55 }
 0x123   : > { %v1185_v35 = vadd.f32 %v2058_v33, %v1161_v24  ;;  %v1099_v30 = vadd.f32 -0.18628806, %v1091_v39  ;;  %v1138_v45 = vmul.f32 %v1130_v59, %v2013_v16  ;;  %v2144_v46 = vsel %vm2126_vm10, %v991_v19, %v987_v14  ;;  %v756_v24 = vpop.f32.mrf.mxu0 }
 0x124   : > { %v1068_v33 = vadd.f32 -1.135204, %v1060_v29  ;;  %v1029_v32 = vmul.f32 0.17087276, %v2144_v46  ;;  %v995_v40 = vmul.f32 %v1417_v2, %v2114_v11  ;;  %v815_v13 = vsel %vm563_vm0, %v807_v42, %v800_v47 }
 0x125   : > { %v1194_v34 = vmul.f32 1.442695, %v1185_v35  ;;  %v1107_v31 = vmul.f32 %v1099_v30, %v2061_v61  ;;  %v1146_v5 = vadd.f32 1.0000237, %v1138_v45  ;;  %v816_v19 = vmul.f32 %v1874_v26, %v815_v13 }
 0x126   : > { %v1076_v51 = vmul.f32 %v1068_v33, %v2105_v9  ;;  %v1037_v48 = vadd.f32 -0.82215226, %v1029_v32  ;;  %v996_v59 = vsub.f32 1.0, %v995_v40  ;;  %v808_v35 = vsel %vm563_vm0, %v806_v4, %v807_v42 }
 0x127   : > { %1418 = vpow2.f32 %v1194_v34  ;;  %v1115_v39 = vadd.f32 0.09678418, %v1107_v31  ;;  %v1154_v37 = vmul.f32 %v1146_v5, %v2013_v16  ;;  %v831_v29 = vadd.f32 %v808_v35, %v756_v24 }
 0x128   : > { %v1084_v30 = vadd.f32 0.27886808, %v1076_v51  ;;  %v1045_v47 = vmul.f32 %v1037_v48, %v2144_v46  ;;  %v997_v45 = vmul.f32 %v1417_v2, %v996_v59  ;;  %vm1000_vm12 = vweird.f32 %v1417_v2 }
 0x129   : > { %v1123_v38 = vmul.f32 %v1115_v39, %v2061_v61  ;;  %v1162_v14 = vadd.f32 -1.2655122, %v1154_v37  ;;  %v824_v34 = vadd.f32 %v816_v19, %v1891_v41  ;;  %v1006_v33 = vor.u32 1.1754944e-38, %v1005_v23  ;;  %vm1001_vm0 = vmor %vm999_vm11, %vm1000_vm12 }
 0x12a   : > { %v1092_v26 = vmul.f32 %v1084_v30, %v2105_v9  ;;  %v1053_v15 = vadd.f32 1.4885159, %v1045_v47  ;;  %v998_v42 = vadd.f32 %v1417_v2, %v997_v45  ;;  %v2179_v24 = vadd.f32 %v855_v50, %v831_v29 }
 0x12b   : > { %v1131_v31 = vadd.f32 0.37409195, %v1123_v38  ;;  %v1186_v4 = vadd.f32 %v2082_v52, %v1162_v14  ;;  %v2172_v32 = vadd.f32 %v1898_v43, %v824_v34  ;;  %vm1004_vm14 = vcmp.eq.f32.partialorder %v1003_v18, 8.507059e+37 }
 0x12c   : > { %v1100_v41 = vadd.f32 -0.18628806, %v1092_v26  ;;  %v1061_v13 = vmul.f32 %v1053_v15, %v2144_v46  ;;  %v1002_v10 = vsel %vm1001_vm0, %v1417_v2, %v998_v42  ;;  %v2192_v2 = vmul.f32 0.70710677, %v2179_v24 }
 0x12d   : > { %v1419_v5 = vpop.eup %1418  ;;  %v1139_v40 = vmul.f32 %v1131_v31, %v2061_v61  ;;  %v1196_v52 = vmul.f32 1.442695, %v1186_v4  ;;  %v2183_v51 = vsel %vm1004_vm14, %v1006_v33, %v1002_v10  ;;  %v2187_v11 = vmul.f32 0.70710677, %v2172_v32 }
 0x12e   : > { %v1209_v55 = vmul.f32 %v1419_v5, %v1973_v25  ;;  %v1108_v43 = vmul.f32 %v1100_v41, %v2105_v9  ;;  %v1069_v39 = vadd.f32 -1.135204, %v1061_v13  ;;  %v1030_v37 = vmul.f32 0.17087276, %v2183_v51 }
 0x12f   : > { %v1147_v23 = vadd.f32 1.0000237, %v1139_v40  ;;  %1420 = vpow2.f32 %v1196_v52  ;;  %v2328_v35 = vsub.f32 0.0, %v1962_v7  ;;  %v2198_v47 = vand.u32 2147483647, %v2187_v11 }
 0x130   : > { %v1217_v48 = vsub.f32 1.0, %v1209_v55  ;;  %v1116_v19 = vadd.f32 0.09678418, %v1108_v43  ;;  %v1077_v25 = vmul.f32 %v1069_v39, %v2144_v46  ;;  %v1038_v30 = vadd.f32 -0.82215226, %v1030_v37 }
 0x131   : > { %v1155_v59 = vmul.f32 %v1147_v23, %v2061_v61  ;;  %v1179_v38 = vmul.f32 %v2328_v35, %v1962_v7  ;;  %v2202_v34 = vand.u32 2147483647, %v2192_v2  ;;  %v865_v31 = vmul.f32 0.5, %v1913_v57 }
 0x132   : > { %v1233_v18 = vsub.f32 0.0, %v1217_v48  ;;  %v1124_v14 = vmul.f32 %v1116_v19, %v2105_v9  ;;  %v1085_v45 = vadd.f32 0.27886808, %v1077_v25  ;;  %v1046_v15 = vmul.f32 %v1038_v30, %v2183_v51 }
 0x133   : > { %v1163_v29 = vadd.f32 -1.2655122, %v1155_v59  ;;  %v888_v7 = vmul.f32 0.5, %v2198_v47  ;;  %v895_v13 = vmul.f32 0.5, %v2202_v34  ;;  %v1172_v10 = vsub.f32 0.0, %v2000_v1 }
 0x134   : > { %v1241_v26 = vsel %vm1225_vm13, %v1217_v48, %v1233_v18  ;;  %v1132_v42 = vadd.f32 0.37409195, %v1124_v14  ;;  %v1093_v33 = vmul.f32 %v1085_v45, %v2144_v46  ;;  %v1054_v40 = vadd.f32 1.4885159, %v1046_v15 }
 0x135   : > { %v1249_v50 = vadd.f32 1.0, %v1241_v26  ;;  %v1187_v4 = vadd.f32 %v1179_v38, %v1163_v29  ;;  %v1421_v5 = vpop.eup %1420  ;;  %v2210_v41 = vadd.f32 1.0, %v888_v7  ;;  %v1173_v18 = vsub.f32 0.0, %v2048_v22 }
 0x136   : > { %v1210_v62 = vmul.f32 %v1421_v5, %v2013_v16  ;;  %v1140_v52 = vmul.f32 %v1132_v42, %v2105_v9  ;;  %v1101_v23 = vadd.f32 -0.18628806, %v1093_v33  ;;  %v1062_v43 = vmul.f32 %v1054_v40, %v2183_v51 }
 0x137   : > { %v1257_v57 = vmul.f32 %v1249_v50, %v865_v31  ;;  %v1198_v55 = vmul.f32 1.442695, %v1187_v4  ;;  %1422 = vrcp.f32 %v2210_v41  ;;  %v2229_v35 = vadd.f32 1.0, %v895_v13 }
 0x138   : > { %v1218_v48 = vsub.f32 1.0, %v1210_v62  ;;  %v1148_v16 = vadd.f32 1.0000237, %v1140_v52  ;;  %v1109_v37 = vmul.f32 %v1101_v23, %v2144_v46  ;;  %v1070_v59 = vadd.f32 -1.135204, %v1062_v43 }
 0x139   : > { %v1265_v39 = vmul.f32 %v1257_v57, %v1925_v3  ;;  %1424 = vpow2.f32 %v1198_v55  ;;  %v866_v38 = vmul.f32 0.5, %v1932_v17  ;;  %vm1226_vm15 = vcmp.ge.f32.partialorder %v1935_v21, 0.0 }
 0x13a   : > { %v1234_v19 = vsub.f32 0.0, %v1218_v48  ;;  %v1156_v25 = vmul.f32 %v1148_v16, %v2105_v9  ;;  %v1117_v30 = vadd.f32 0.09678418, %v1109_v37  ;;  %v1078_v3 = vmul.f32 %v1070_v59, %v2183_v51 }
 0x13b   : > { %1273 = vst [vmem:[%s2219_s30 + $0x8] sm:$0xff] %v1265_v39  ;;  %v1180_v45 = vmul.f32 %v1172_v10, %v2000_v1  ;;  %1426 = vrcp.f32 %v2229_v35  ;;  %v867_v15 = vmul.f32 0.5, %v1953_v53  ;;  %vm1227_vm1 = vcmp.ge.f32.partialorder %v1957_v60, 0.0 }
 0x13c   : > { %v1242_v29 = vsel %vm1226_vm15, %v1218_v48, %v1234_v19  ;;  %v1164_v14 = vadd.f32 -1.2655122, %v1156_v25  ;;  %v1125_v7 = vmul.f32 %v1117_v30, %v2144_v46  ;;  %v1086_v50 = vadd.f32 0.27886808, %v1078_v3 }
 0x13d   : > { %v1423_v31 = vpop.eup %1422  ;;  %v1250_v26 = vadd.f32 1.0, %v1242_v29  ;;  %v1181_v21 = vmul.f32 %v1173_v18, %v2048_v22  ;;  %v913_v57 = vand.u32 2147483647, %v2210_v41  ;;  %v915_v62 = vand.u32 2147483648, %v2210_v41 }
 0x13e   : > { %v1188_v17 = vadd.f32 %v1180_v45, %v1164_v14  ;;  %v905_v42 = vmul.f32 %v1423_v31, %v2210_v41  ;;  %v1133_v5 = vadd.f32 0.37409195, %v1125_v7  ;;  %v1094_v40 = vmul.f32 %v1086_v50, %v2183_v51 }
 0x13f   : > { %v1425_v4 = vpop.eup %1424  ;;  %v1258_v33 = vmul.f32 %v1250_v26, %v866_v38  ;;  %vm909_vm2 = vweird.f32 %v2210_v41  ;;  %vm910_vm4 = vweird.f32 %v1423_v31  ;;  %vm914_vm5 = vcmp.eq.f32.partialorder %v913_v57, 8.507059e+37 }
 0x140   : > { %v1211_v1 = vmul.f32 %v1425_v4, %v2061_v61  ;;  %v1200_v13 = vmul.f32 1.442695, %v1188_v17  ;;  %v906_v53 = vsub.f32 1.0, %v905_v42  ;;  %v1141_v22 = vmul.f32 %v1133_v5, %v2144_v46  ;;  %vm911_vm6 = vmor %vm909_vm2, %vm910_vm4 }
 0x141   : > { %v1266_v55 = vmul.f32 %v1258_v33, %v1940_v27  ;;  %v1102_v10 = vadd.f32 -0.18628806, %v1094_v40  ;;  %v1427_v23 = vpop.eup %1426  ;;  %v916_v27 = vor.u32 1.1754944e-38, %v915_v62  ;;  %v1018_v59 = vand.u32 2147483647, %v2229_v35 }
 0x142   : > { %v1219_v52 = vsub.f32 1.0, %v1211_v1  ;;  %1428 = vpow2.f32 %v1200_v13  ;;  %v907_v43 = vmul.f32 %v1423_v31, %v906_v53  ;;  %v1149_v39 = vadd.f32 1.0000237, %v1141_v22 }
 0x143   : > { %1274 = vst [vmem:[%s2219_s30 + $0x10] sm:$0xff] %v1266_v55  ;;  %v1110_v48 = vmul.f32 %v1102_v10, %v2183_v51  ;;  %v1010_v16 = vmul.f32 %v1427_v23, %v2229_v35  ;;  %vm1015_vm7 = vweird.f32 %v1427_v23  ;;  %v1020_v3 = vand.u32 2147483648, %v2229_v35 }
 0x144   : > { %v1235_v61 = vsub.f32 0.0, %v1219_v52  ;;  %v908_v37 = vadd.f32 %v1423_v31, %v907_v43  ;;  %v1157_v25 = vmul.f32 %v1149_v39, %v2144_v46  ;;  %vm1014_vm8 = vweird.f32 %v2229_v35 }
 0x145   : > { %v1118_v18 = vadd.f32 0.09678418, %v1110_v48  ;;  %v1011_v41 = vsub.f32 1.0, %v1010_v16  ;;  %vm1016_vm9 = vmor %vm1014_vm8, %vm1015_vm7  ;;  %vm1019_vm10 = vcmp.eq.f32.partialorder %v1018_v59, 8.507059e+37  ;;  %v1021_v5 = vor.u32 1.1754944e-38, %v1020_v3 }
 0x146   : > { %v1243_v19 = vsel %vm1227_vm1, %v1219_v52, %v1235_v61  ;;  %v912_v30 = vsel %vm911_vm6, %v1423_v31, %v908_v37  ;;  %v1165_v29 = vadd.f32 -1.2655122, %v1157_v25  ;;  %v1174_v35 = vsub.f32 0.0, %v2097_v54 }
 0x147   : > { %v1251_v38 = vadd.f32 1.0, %v1243_v19  ;;  %v1126_v14 = vmul.f32 %v1118_v18, %v2183_v51  ;;  %v2257_v45 = vsel %vm914_vm5, %v916_v27, %v912_v30  ;;  %v1012_v26 = vmul.f32 %v1427_v23, %v1011_v41 }
 0x148   : > { %v1429_v7 = vpop.eup %1428  ;;  %v1024_v60 = vmul.f32 0.17087276, %v2257_v45  ;;  %v1189_v17 = vadd.f32 %v1181_v21, %v1165_v29  ;;  %vm1228_vm3 = vcmp.ge.f32.partialorder %v1991_v56, 0.0  ;;  %v1182_v48 = vmul.f32 %v1174_v35, %v2097_v54 }
 0x149   : > { %v1259_v50 = vmul.f32 %v1251_v38, %v867_v15  ;;  %v1212_v4 = vmul.f32 %v1429_v7, %v2105_v9  ;;  %v1134_v31 = vadd.f32 0.37409195, %v1126_v14  ;;  %v1013_v42 = vadd.f32 %v1427_v23, %v1012_v26 }
 0x14a   : > { %v1032_v1 = vadd.f32 -0.82215226, %v1024_v60  ;;  %v1202_v13 = vmul.f32 1.442695, %v1189_v17  ;;  %vm1229_vm11 = vcmp.ge.f32.partialorder %v2036_v20, 0.0  ;;  %v869_v7 = vmul.f32 0.5, %v2023_v8 }
 0x14b   : > { %v1267_v33 = vmul.f32 %v1259_v50, %v1967_v12  ;;  %v1220_v40 = vsub.f32 1.0, %v1212_v4  ;;  %v1142_v15 = vmul.f32 %v1134_v31, %v2183_v51  ;;  %v1017_v53 = vsel %vm1016_vm9, %v1427_v23, %v1013_v42 }
 0x14c   : > { %v1040_v9 = vmul.f32 %v1032_v1, %v2257_v45  ;;  %v2268_v21 = vsel %vm1019_vm10, %v1021_v5, %v1017_v53  ;;  %1430 = vpow2.f32 %v1202_v13  ;;  %v868_v23 = vmul.f32 0.5, %v1981_v44 }
 0x14d   : > { %1275 = vst [vmem:[%s2219_s30 + $0x18] sm:$0xff] %v1267_v33  ;;  %v1236_v57 = vsub.f32 0.0, %v1220_v40  ;;  %v1150_v12 = vadd.f32 1.0000237, %v1142_v15  ;;  %v1031_v62 = vmul.f32 0.17087276, %v2268_v21 }
 0x14e   : > { %v1048_v55 = vadd.f32 1.4885159, %v1040_v9  ;;  %vm1230_vm12 = vcmp.ge.f32.partialorder %v2085_v63, 0.0  ;;  %vm1224_vm13 = vcmp.ge.f32.partialorder %v2187_v11, 0.0  ;;  %vm1231_vm0 = vcmp.ge.f32.partialorder %v2192_v2, 0.0 }
 0x14f   : > { %v1244_v52 = vsel %vm1228_vm3, %v1220_v40, %v1236_v57  ;;  %v1158_v22 = vmul.f32 %v1150_v12, %v2183_v51  ;;  %v1039_v10 = vadd.f32 -0.82215226, %v1031_v62 }
 0x150   : > { %v1252_v43 = vadd.f32 1.0, %v1244_v52  ;;  %v1056_v61 = vmul.f32 %v1048_v55, %v2257_v45  ;;  %v1168_v55 = vsub.f32 0.0, %v2198_v47 }
 0x151   : > { %v1166_v39 = vadd.f32 -1.2655122, %v1158_v22  ;;  %v1047_v16 = vmul.f32 %v1039_v10, %v2268_v21 }
 0x152   : > { %v1260_v37 = vmul.f32 %v1252_v43, %v868_v23  ;;  %v1064_v27 = vadd.f32 -1.135204, %v1056_v61  ;;  %v1431_v59 = vpop.eup %1430  ;;  %v1176_v61 = vmul.f32 %v1168_v55, %v2198_v47 }
 0x153   : > { %v1190_v56 = vadd.f32 %v1182_v48, %v1166_v39  ;;  %v1055_v19 = vadd.f32 1.4885159, %v1047_v16  ;;  %v1213_v18 = vmul.f32 %v1431_v59, %v2144_v46 }
 0x154   : > { %v1268_v25 = vmul.f32 %v1260_v37, %v1994_v58  ;;  %v1072_v44 = vmul.f32 %v1064_v27, %v2257_v45 }
 0x155   : > { %v1204_v41 = vmul.f32 1.442695, %v1190_v56  ;;  %v1063_v38 = vmul.f32 %v1055_v19, %v2268_v21  ;;  %v1221_v30 = vsub.f32 1.0, %v1213_v18 }
 0x156   : > { %1276 = vst [vmem:[%s2219_s30 + $0x20] sm:$0xff] %v1268_v25  ;;  %v1080_v3 = vadd.f32 0.27886808, %v1072_v44 }
 0x157   : > { %1432 = vpow2.f32 %v1204_v41  ;;  %v1071_v54 = vadd.f32 -1.135204, %v1063_v38  ;;  %v1237_v29 = vsub.f32 0.0, %v1221_v30 }
 0x158   : > { %v1088_v14 = vmul.f32 %v1080_v3, %v2257_v45 }
 0x159   : > { %v1079_v26 = vmul.f32 %v1071_v54, %v2268_v21  ;;  %v1245_v58 = vsel %vm1229_vm11, %v1221_v30, %v1237_v29  ;;  %v864_v30 = vmul.f32 0.5, %v2172_v32 }
 0x15a   : > { %v1096_v46 = vadd.f32 -0.18628806, %v1088_v14  ;;  %v1253_v50 = vadd.f32 1.0, %v1245_v58 }
 0x15b   : > { %v1087_v60 = vadd.f32 0.27886808, %v1079_v26  ;;  %v871_v26 = vmul.f32 0.5, %v2179_v24 }
 0x15c   : > { %v1104_v4 = vmul.f32 %v1096_v46, %v2257_v45  ;;  %v1261_v31 = vmul.f32 %v1253_v50, %v869_v7 }
 0x15d   : > { %v1433_v17 = vpop.eup %1432  ;;  %v1095_v42 = vmul.f32 %v1087_v60, %v2268_v21 }
 0x15e   : > { %v1214_v33 = vmul.f32 %v1433_v17, %v2183_v51  ;;  %v1112_v1 = vadd.f32 0.09678418, %v1104_v4  ;;  %v1269_v20 = vmul.f32 %v1261_v31, %v2039_v36  ;;  %v870_v51 = vmul.f32 0.5, %v2069_v6 }
 0x15f   : > { %v1103_v5 = vadd.f32 -0.18628806, %v1095_v42  ;;  %v1175_v6 = vsub.f32 0.0, %v2202_v34 }
 0x160   : > { %v1222_v40 = vsub.f32 1.0, %v1214_v33  ;;  %v1120_v13 = vmul.f32 %v1112_v1, %v2257_v45  ;;  %1277 = vst [vmem:[%s2219_s30 + $0x28] sm:$0xff] %v1269_v20 }
 0x161   : > { %v1111_v8 = vmul.f32 %v1103_v5, %v2268_v21  ;;  %v1183_v59 = vmul.f32 %v1175_v6, %v2202_v34 }
 0x162   : > { %v1238_v15 = vsub.f32 0.0, %v1222_v40  ;;  %v1128_v53 = vadd.f32 0.37409195, %v1120_v13 }
 0x163   : > { %v1119_v35 = vadd.f32 0.09678418, %v1111_v8 }
 0x164   : > { %v1246_v9 = vsel %vm1230_vm12, %v1222_v40, %v1238_v15  ;;  %v1136_v57 = vmul.f32 %v1128_v53, %v2257_v45 }
 0x165   : > { %v1254_v12 = vadd.f32 1.0, %v1246_v9  ;;  %v1127_v36 = vmul.f32 %v1119_v35, %v2268_v21 }
 0x166   : > { %v1144_v62 = vadd.f32 1.0000237, %v1136_v57 }
 0x167   : > { %v1262_v52 = vmul.f32 %v1254_v12, %v870_v51  ;;  %v1135_v22 = vadd.f32 0.37409195, %v1127_v36 }
 0x168   : > { %v1152_v10 = vmul.f32 %v1144_v62, %v2257_v45 }
 0x169   : > { %v1270_v23 = vmul.f32 %v1262_v52, %v2134_v0  ;;  %v1143_v63 = vmul.f32 %v1135_v22, %v2268_v21 }
 0x16a   : > { %v1160_v43 = vadd.f32 -1.2655122, %v1152_v10 }
 0x16b   : > { %1278 = vst [vmem:[%s2219_s30 + $0x30] sm:$0xff] %v1270_v23  ;;  %v1151_v39 = vadd.f32 1.0000237, %v1143_v63 }
 0x16c   : > { %v1184_v48 = vadd.f32 %v1176_v61, %v1160_v43 }
 0x16d   : > { %v1159_v16 = vmul.f32 %v1151_v39, %v2268_v21 }
 0x16e   : > { %v1192_v37 = vmul.f32 1.442695, %v1184_v48 }
 0x16f   : > { %v1167_v27 = vadd.f32 -1.2655122, %v1159_v16 }
 0x170   : > { %1434 = vpow2.f32 %v1192_v37 }
 0x171   : > { %v1191_v56 = vadd.f32 %v1183_v59, %v1167_v27 }
 0x173   : > { %v1206_v19 = vmul.f32 1.442695, %v1191_v56 }
 0x175   : > { %1436 = vpow2.f32 %v1206_v19 }
 0x176   : > { %v1435_v0 = vpop.eup %1434 }
 0x177   : > { %v1208_v25 = vmul.f32 %v1435_v0, %v2257_v45 }
 0x179   : > { %v1216_v18 = vsub.f32 1.0, %v1208_v25 }
 0x17b   : > { %v1437_v47 = vpop.eup %1436  ;;  %v1232_v44 = vsub.f32 0.0, %v1216_v18 }
 0x17c   : > { %v1215_v41 = vmul.f32 %v1437_v47, %v2268_v21 }
 0x17d   : > { %v1240_v38 = vsel %vm1224_vm13, %v1216_v18, %v1232_v44 }
 0x17e   : > { %v1248_v34 = vadd.f32 1.0, %v1240_v38  ;;  %v1223_v3 = vsub.f32 1.0, %v1215_v41 }
 0x180   : > { %v1256_v54 = vmul.f32 %v1248_v34, %v864_v30  ;;  %v1239_v29 = vsub.f32 0.0, %v1223_v3 }
 0x182   : > { %v1264_v45 = vmul.f32 %v1256_v54, %v1905_v49  ;;  %v1247_v14 = vsel %vm1231_vm0, %v1223_v3, %v1239_v29 }
 0x183   : > { %v1255_v58 = vadd.f32 1.0, %v1247_v14 }
 0x184   : > { %1272 = vst [vmem:[%s2219_s30] sm:$0xff] %v1264_v45 }
 0x185   : > { %v1263_v11 = vmul.f32 %v1255_v58, %v871_v26 }
 0x187   : > { %v1271_v46 = vmul.f32 %v1263_v11, %v2137_v28 }
 0x189   : > { %1279 = vst [vmem:[%s2219_s30 + $0x38] sm:$0xff] %v1271_v46 }
 0x18a PF: > { %s14_s15 = sadd.s32 1, %s1444_s15  }
 0x18b   : > { %p11_p4 = scmp.ge.s32.totalorder %s14_s15, 4  }
 0x18d   :  { %13 = sbr.rel (!%p11_p4) target bundleno = 1 (0x1), region = 69 }

</bundles_post_ra>
